<compile_context>
chip_gen: v5e
topology: v5e:2x2
jax: 0.10.0
libtpu: 0.0.40
codegen_flags: <defaults>
</compile_context>

<pallas_src>
import jax
import jax.numpy as jnp
from jax import lax
from jax.experimental import pallas as pl
from jax.experimental.pallas import tpu as pltpu


# ----------------------------- Pallas kernel ---------------------------------
def sentiment_lstm_kernel(
    x_flat_ref,            # (T*B, E)    f32, time-major embeddings, pre-flattened
    wih0_ref,              # (E, 4H)     layer-0 input weights (pre-transposed)
    whh0_ref,              # (H, 4H)     layer-0 recurrent weights (pre-transposed)
    b0_ref,                # (1, 4H)     b_ih0 + b_hh0
    wih1_ref,              # (H, 4H)     layer-1 input weights (pre-transposed)
    whh1_ref,              # (H, 4H)     layer-1 recurrent weights (pre-transposed)
    b1_ref,                # (1, 4H)     b_ih1 + b_hh1
    fcw_ref,               # (1, H)      fc weight, native PyTorch layout
    fcb_ref,               # (1, 1)      fc bias
    h0_ref, c0_ref,        # (2, B, H)   initial hidden / cell
    out_ref,               # (B, 1)      sigmoid(fc(h_final_layer2))
    hn_ref, cn_ref,        # (2, B, H)   final hidden / cell
):
    _, B, H = h0_ref.shape
    TB, E = x_flat_ref.shape
    T = TB // B

    # ---- hoisted layer-0 input projection: one big MXU matmul, bias folded in ----
    x0_gates = (jnp.dot(x_flat_ref[...], wih0_ref[...],
                        preferred_element_type=jnp.float32)
                + b0_ref[...])                                       # (T*B, 4H)

    # ---- loop-invariant operands, hoisted (JAX does not CSE broadcast_in_dim) ----
    whh0 = whh0_ref[...]                                             # (H, 4H)
    wih1 = wih1_ref[...]                                             # (H, 4H)
    whh1 = whh1_ref[...]                                             # (H, 4H)
    b1_b = jnp.broadcast_to(b1_ref[...], (B, 4 * H))                 # (B, 4H)

    # lane masks for full-width gate activations (PyTorch gate order [i, f, g, o]):
    #   sigmoid(x) = 0.5*(tanh(0.5*x)+1)  on i/f/o lanes, plain tanh on g lanes.
    col = lax.broadcasted_iota(jnp.int32, (1, 4 * H), 1)
    is_g = jnp.logical_and(col >= 2 * H, col < 3 * H)
    is_g_b = jnp.broadcast_to(is_g, (B, 4 * H))
    pre_scale_b = jnp.broadcast_to(
        jnp.where(is_g, jnp.float32(1.0), jnp.float32(0.5)), (B, 4 * H))

    def gates_to_hc(gates, c):
        # one full-width EUP tanh + two masked VPU ops instead of 4 quarter-lane pushes
        y = jnp.tanh(gates * pre_scale_b)                            # (B, 4H)
        act = jnp.where(is_g_b, y, 0.5 * (y + 1.0))
        i = act[:, 0 * H:1 * H]
        f = act[:, 1 * H:2 * H]
        g = act[:, 2 * H:3 * H]
        o = act[:, 3 * H:4 * H]
        c_new = f * c + i * g
        h_new = o * jnp.tanh(c_new)
        return h_new, c_new

    # state lives in vregs; spilled to the output refs only once, after the loop
    h1, c1 = h0_ref[0], c0_ref[0]
    h2, c2 = h0_ref[1], c0_ref[1]

    # fully unrolled recurrence (T is small & static) -> LLO sees across iterations
    for t in range(T):
        # layer 0: only the recurrent matmul remains on the serial path
        gates0 = x0_gates[t * B:(t + 1) * B, :] + jnp.dot(
            h1, whh0, preferred_element_type=jnp.float32)
        h1, c1 = gates_to_hc(gates0, c1)

        # inter-layer dropout (p=0.5) is identity in eval mode
        # layer 1: two separate dots (no per-step concat); h2@Whh1 depends only on h2(t-1)
        gates1 = (jnp.dot(h1, wih1, preferred_element_type=jnp.float32)
                  + jnp.dot(h2, whh1, preferred_element_type=jnp.float32)
                  + b1_b)
        h2, c2 = gates_to_hc(gates1, c2)

    # self.dropout (p=0.3) is identity in eval mode.
    # fc with output_size=1: VPU broadcast-mul + lane reduce, no N=1 MXU matmul.
    logits = jnp.sum(h2 * fcw_ref[...], axis=1, keepdims=True) + fcb_ref[...]
    out_ref[...] = 0.5 * (jnp.tanh(0.5 * logits) + 1.0)              # sig_out[:, -1]

    hn_ref[0] = h1
    hn_ref[1] = h2
    cn_ref[0] = c1
    cn_ref[1] = c2


# ------------------------------ JAX wrapper -----------------------------------
@jax.jit
def sentiment_rnn_forward(x_tokens, hidden, params):
    """x_tokens: (B, T) int32; hidden: (h0, c0) each (n_layers=2, B, H)."""
    B, T = x_tokens.shape
    H = params["whh0_t"].shape[0]                                # (H, 4H)
    E = params["wih0_t"].shape[0]                                # (E, 4H)

    # Embedding lookup (data-dependent gather) + time-major flatten kept in XLA glue,
    # so the kernel sees a sublane/lane-dense (T*B, E) operand with no in-kernel reshape.
    embeds = jnp.take(params["emb"], x_tokens, axis=0)           # (B, T, E)
    x_flat = jnp.transpose(embeds, (1, 0, 2)).reshape(T * B, E)  # (T*B, E) time-major

    h0, c0 = hidden
    vmem = pl.BlockSpec(memory_space=pltpu.MemorySpace.VMEM)

    inputs = (
        x_flat,
        params["wih0_t"], params["whh0_t"], params["b0"],
        params["wih1_t"], params["whh1_t"], params["b1"],
        params["fcw"], params["fcb"],
        h0, c0,
    )

    out, hn, cn = pl.pallas_call(
        sentiment_lstm_kernel,
        out_shape=(
            jax.ShapeDtypeStruct((B, 1), jnp.float32),
            jax.ShapeDtypeStruct((2, B, H), jnp.float32),
            jax.ShapeDtypeStruct((2, B, H), jnp.float32),
        ),
        in_specs=[vmem] * len(inputs),
        out_specs=(vmem, vmem, vmem),
    )(*inputs)

    sig_out = out[:, 0]                                          # (B,) == sig_out[:, -1]
    return sig_out, (hn, cn)


# ------------------------------ param init ------------------------------------
def init_params(key, vocab_size, embedding_dim, hidden_dim, output_size):
    ks = jax.random.split(key, 11)
    H, E = hidden_dim, embedding_dim
    s = 0.1
    emb = jax.random.normal(ks[0], (vocab_size, E), jnp.float32)
    # PyTorch LSTM weights are (4H, in_features); pre-transpose for x @ W layout.
    wih0 = s * jax.random.normal(ks[1], (4 * H, E), jnp.float32)
    whh0 = s * jax.random.normal(ks[2], (4 * H, H), jnp.float32)
    bih0 = s * jax.random.normal(ks[3], (4 * H,), jnp.float32)
    bhh0 = s * jax.random.normal(ks[4], (4 * H,), jnp.float32)
    wih1 = s * jax.random.normal(ks[5], (4 * H, H), jnp.float32)
    whh1 = s * jax.random.normal(ks[6], (4 * H, H), jnp.float32)
    bih1 = s * jax.random.normal(ks[7], (4 * H,), jnp.float32)
    bhh1 = s * jax.random.normal(ks[8], (4 * H,), jnp.float32)
    fcw = s * jax.random.normal(ks[9], (output_size, H), jnp.float32)
    fcb = s * jax.random.normal(ks[10], (output_size,), jnp.float32)

    p = {
        "emb": emb,
        "wih0_t": wih0.T,                                       # (E, 4H)
        "whh0_t": whh0.T,                                       # (H, 4H)
        "b0": (bih0 + bhh0).reshape(1, 4 * H),
        "wih1_t": wih1.T,                                       # (H, 4H)
        "whh1_t": whh1.T,                                       # (H, 4H)
        "b1": (bih1 + bhh1).reshape(1, 4 * H),
        "fcw": fcw,                                             # (1, H)
        "fcb": fcb.reshape(1, output_size),                     # (1, 1)
        # raw weights kept for the pure-JAX reference
        "_raw": (wih0, whh0, bih0, bhh0, wih1, whh1, bih1, bhh1, fcw, fcb),
    }
    return p


# --------------------------- pure-JAX reference --------------------------------
def reference_forward(x_tokens, hidden, params):
    wih0, whh0, bih0, bhh0, wih1, whh1, bih1, bhh1, fcw, fcb = params["_raw"]
    embeds = jnp.take(params["emb"], x_tokens, axis=0)          # (B, T, E)
    h0, c0 = hidden

    def cell(x, h, c, wih, whh, bih, bhh):
        g = x @ wih.T + bih + h @ whh.T + bhh
        i, f, gg, o = jnp.split(g, 4, axis=-1)
        c_new = jax.nn.sigmoid(f) * c + jax.nn.sigmoid(i) * jnp.tanh(gg)
        h_new = jax.nn.sigmoid(o) * jnp.tanh(c_new)
        return h_new, c_new

    def step(carry, x_t):
        h1, c1, h2, c2 = carry
        h1, c1 = cell(x_t, h1, c1, wih0, whh0, bih0, bhh0)
        h2, c2 = cell(h1, h2, c2, wih1, whh1, bih1, bhh1)
        return (h1, c1, h2, c2), h2

    carry, _ = lax.scan(step, (h0[0], c0[0], h0[1], c0[1]),
                        jnp.transpose(embeds, (1, 0, 2)))
    h1, c1, h2, c2 = carry
    sig = jax.nn.sigmoid(h2 @ fcw.T + fcb)[:, 0]
    return sig, (jnp.stack([h1, h2]), jnp.stack([c1, c2]))


# ---------------------------------- main ---------------------------------------
if __name__ == "__main__":
    # small, TPU-friendly shapes consistent with the module (scaled-down)
    batch = 8
    seq_len = 8
    vocab_size = 64
    embedding_dim = 32
    hidden_dim = 32
    n_layers = 2
    output_size = 1

    key = jax.random.PRNGKey(0)
    k_par, k_tok = jax.random.split(key)
    params = init_params(k_par, vocab_size, embedding_dim, hidden_dim, output_size)

    x = jax.random.randint(k_tok, (batch, seq_len), 0, vocab_size, dtype=jnp.int32)
    # init_hidden: zeros of shape (n_layers, batch, hidden_dim)
    h0 = jnp.zeros((n_layers, batch, hidden_dim), jnp.float32)
    c0 = jnp.zeros((n_layers, batch, hidden_dim), jnp.float32)

    sig_out, (hn, cn) = sentiment_rnn_forward(x, (h0, c0), params)
    jax.block_until_ready((sig_out, hn, cn))

    # sanity check against a pure-JAX reference
    ref_sig, (ref_hn, ref_cn) = reference_forward(x, (h0, c0), params)
    assert jnp.allclose(sig_out, ref_sig, atol=1e-5), "sig mismatch"
    assert jnp.allclose(hn, ref_hn, atol=1e-5), "h_n mismatch"
    assert jnp.allclose(cn, ref_cn, atol=1e-5), "c_n mismatch"

    print("KERNEL_OK")
</pallas_src>

<mosaic_0001>
module attributes {stable_mosaic.version = 11 : i64} {
  func.func @sentiment_lstm_kernel(%arg0: memref<64x32xf32, #tpu.memory_space<vmem>>, %arg1: memref<32x128xf32, #tpu.memory_space<vmem>>, %arg2: memref<32x128xf32, #tpu.memory_space<vmem>>, %arg3: memref<1x128xf32, #tpu.memory_space<vmem>>, %arg4: memref<32x128xf32, #tpu.memory_space<vmem>>, %arg5: memref<32x128xf32, #tpu.memory_space<vmem>>, %arg6: memref<1x128xf32, #tpu.memory_space<vmem>>, %arg7: memref<1x32xf32, #tpu.memory_space<vmem>>, %arg8: memref<1x1xf32, #tpu.memory_space<vmem>>, %arg9: memref<2x8x32xf32, #tpu.memory_space<vmem>>, %arg10: memref<2x8x32xf32, #tpu.memory_space<vmem>>, %arg11: memref<8x1xf32, #tpu.memory_space<vmem>>, %arg12: memref<2x8x32xf32, #tpu.memory_space<vmem>>, %arg13: memref<2x8x32xf32, #tpu.memory_space<vmem>>) attributes {dimension_semantics = [], scalar_prefetch = 0 : i64, scratch_operands = 0 : i64, tpu.core_type = #tpu.core_type<tc>} {
    %c0 = arith.constant 0 : index
    %c0_0 = arith.constant 0 : index
    %0 = vector.load %arg0[%c0, %c0_0] : memref<64x32xf32, #tpu.memory_space<vmem>>, vector<64x32xf32>
    %c0_1 = arith.constant 0 : index
    %c0_2 = arith.constant 0 : index
    %1 = vector.load %arg1[%c0_1, %c0_2] : memref<32x128xf32, #tpu.memory_space<vmem>>, vector<32x128xf32>
    %cst = arith.constant dense<0.000000e+00> : vector<64x128xf32>
    %2 = tpu.matmul %0, %1, %cst {dimension_numbers = #tpu.dot_dimension_numbers<[1], [0], [0], [1], [0, 0, 1, 1], [], []>} : vector<64x32xf32>, vector<32x128xf32>, vector<64x128xf32> -> vector<64x128xf32>
    %c0_3 = arith.constant 0 : index
    %c0_4 = arith.constant 0 : index
    %3 = vector.load %arg3[%c0_3, %c0_4] : memref<1x128xf32, #tpu.memory_space<vmem>>, vector<1x128xf32>
    %4 = vector.broadcast %3 : vector<1x128xf32> to vector<64x128xf32>
    %5 = arith.addf %2, %4 : vector<64x128xf32>
    %c0_5 = arith.constant 0 : index
    %c0_6 = arith.constant 0 : index
    %6 = vector.load %arg2[%c0_5, %c0_6] : memref<32x128xf32, #tpu.memory_space<vmem>>, vector<32x128xf32>
    %c0_7 = arith.constant 0 : index
    %c0_8 = arith.constant 0 : index
    %7 = vector.load %arg4[%c0_7, %c0_8] : memref<32x128xf32, #tpu.memory_space<vmem>>, vector<32x128xf32>
    %c0_9 = arith.constant 0 : index
    %c0_10 = arith.constant 0 : index
    %8 = vector.load %arg5[%c0_9, %c0_10] : memref<32x128xf32, #tpu.memory_space<vmem>>, vector<32x128xf32>
    %c0_11 = arith.constant 0 : index
    %c0_12 = arith.constant 0 : index
    %9 = vector.load %arg6[%c0_11, %c0_12] : memref<1x128xf32, #tpu.memory_space<vmem>>, vector<1x128xf32>
    %10 = vector.shape_cast %9 : vector<1x128xf32> to vector<1x128xf32>
    %11 = vector.broadcast %10 : vector<1x128xf32> to vector<8x128xf32>
    %12 = tpu.iota {dimensions = array<i32: 1>} : vector<1x128xi32>
    %c64_i32 = arith.constant 64 : i32
    %13 = vector.broadcast %c64_i32 : i32 to vector<1x128xi32>
    %14 = arith.cmpi sge, %12, %13 : vector<1x128xi32>
    %c96_i32 = arith.constant 96 : i32
    %15 = vector.broadcast %c96_i32 : i32 to vector<1x128xi32>
    %16 = arith.cmpi slt, %12, %15 : vector<1x128xi32>
    %17 = arith.andi %14, %16 : vector<1x128xi1>
    %18 = vector.shape_cast %17 : vector<1x128xi1> to vector<1x128xi1>
    %19 = vector.broadcast %18 : vector<1x128xi1> to vector<8x128xi1>
    %cst_13 = arith.constant 1.000000e+00 : f32
    %cst_14 = arith.constant 5.000000e-01 : f32
    %20 = vector.broadcast %cst_13 : f32 to vector<1x128xf32>
    %21 = vector.broadcast %cst_14 : f32 to vector<1x128xf32>
    %22 = arith.select %17, %20, %21 : vector<1x128xi1>, vector<1x128xf32>
    %23 = vector.shape_cast %22 : vector<1x128xf32> to vector<1x128xf32>
    %24 = vector.broadcast %23 : vector<1x128xf32> to vector<8x128xf32>
    %c0_15 = arith.constant 0 : index
    %c0_16 = arith.constant 0 : index
    %c0_17 = arith.constant 0 : index
    %25 = vector.load %arg9[%c0_15, %c0_16, %c0_17] : memref<2x8x32xf32, #tpu.memory_space<vmem>>, vector<1x8x32xf32>
    %26 = vector.shape_cast %25 : vector<1x8x32xf32> to vector<8x32xf32>
    %c0_18 = arith.constant 0 : index
    %c0_19 = arith.constant 0 : index
    %c0_20 = arith.constant 0 : index
    %27 = vector.load %arg10[%c0_18, %c0_19, %c0_20] : memref<2x8x32xf32, #tpu.memory_space<vmem>>, vector<1x8x32xf32>
    %28 = vector.shape_cast %27 : vector<1x8x32xf32> to vector<8x32xf32>
    %c1 = arith.constant 1 : index
    %c0_21 = arith.constant 0 : index
    %c0_22 = arith.constant 0 : index
    %29 = vector.load %arg9[%c1, %c0_21, %c0_22] : memref<2x8x32xf32, #tpu.memory_space<vmem>>, vector<1x8x32xf32>
    %30 = vector.shape_cast %29 : vector<1x8x32xf32> to vector<8x32xf32>
    %c1_23 = arith.constant 1 : index
    %c0_24 = arith.constant 0 : index
    %c0_25 = arith.constant 0 : index
    %31 = vector.load %arg10[%c1_23, %c0_24, %c0_25] : memref<2x8x32xf32, #tpu.memory_space<vmem>>, vector<1x8x32xf32>
    %32 = vector.shape_cast %31 : vector<1x8x32xf32> to vector<8x32xf32>
    %33 = vector.extract_strided_slice %5 {offsets = [0, 0], sizes = [8, 128], strides = [1, 1]} : vector<64x128xf32> to vector<8x128xf32>
    %cst_26 = arith.constant dense<0.000000e+00> : vector<8x128xf32>
    %34 = tpu.matmul %26, %6, %cst_26 {dimension_numbers = #tpu.dot_dimension_numbers<[1], [0], [0], [1], [0, 0, 1, 1], [], []>} : vector<8x32xf32>, vector<32x128xf32>, vector<8x128xf32> -> vector<8x128xf32>
    %35 = arith.addf %33, %34 : vector<8x128xf32>
    %36 = arith.mulf %35, %24 : vector<8x128xf32>
    %37 = math.tanh %36 : vector<8x128xf32>
    %cst_27 = arith.constant 1.000000e+00 : f32
    %38 = vector.broadcast %cst_27 : f32 to vector<8x128xf32>
    %39 = arith.addf %37, %38 : vector<8x128xf32>
    %cst_28 = arith.constant 5.000000e-01 : f32
    %40 = vector.broadcast %cst_28 : f32 to vector<8x128xf32>
    %41 = arith.mulf %40, %39 : vector<8x128xf32>
    %42 = arith.select %19, %37, %41 : vector<8x128xi1>, vector<8x128xf32>
    %43 = vector.extract_strided_slice %42 {offsets = [0, 0], sizes = [8, 32], strides = [1, 1]} : vector<8x128xf32> to vector<8x32xf32>
    %44 = vector.extract_strided_slice %42 {offsets = [0, 32], sizes = [8, 32], strides = [1, 1]} : vector<8x128xf32> to vector<8x32xf32>
    %45 = vector.extract_strided_slice %42 {offsets = [0, 64], sizes = [8, 32], strides = [1, 1]} : vector<8x128xf32> to vector<8x32xf32>
    %46 = vector.extract_strided_slice %42 {offsets = [0, 96], sizes = [8, 32], strides = [1, 1]} : vector<8x128xf32> to vector<8x32xf32>
    %47 = arith.mulf %44, %28 : vector<8x32xf32>
    %48 = arith.mulf %43, %45 : vector<8x32xf32>
    %49 = arith.addf %47, %48 : vector<8x32xf32>
    %50 = math.tanh %49 : vector<8x32xf32>
    %51 = arith.mulf %46, %50 : vector<8x32xf32>
    %cst_29 = arith.constant dense<0.000000e+00> : vector<8x128xf32>
    %52 = tpu.matmul %51, %7, %cst_29 {dimension_numbers = #tpu.dot_dimension_numbers<[1], [0], [0], [1], [0, 0, 1, 1], [], []>} : vector<8x32xf32>, vector<32x128xf32>, vector<8x128xf32> -> vector<8x128xf32>
    %cst_30 = arith.constant dense<0.000000e+00> : vector<8x128xf32>
    %53 = tpu.matmul %30, %8, %cst_30 {dimension_numbers = #tpu.dot_dimension_numbers<[1], [0], [0], [1], [0, 0, 1, 1], [], []>} : vector<8x32xf32>, vector<32x128xf32>, vector<8x128xf32> -> vector<8x128xf32>
    %54 = arith.addf %52, %53 : vector<8x128xf32>
    %55 = arith.addf %54, %11 : vector<8x128xf32>
    %56 = arith.mulf %55, %24 : vector<8x128xf32>
    %57 = math.tanh %56 : vector<8x128xf32>
    %cst_31 = arith.constant 1.000000e+00 : f32
    %58 = vector.broadcast %cst_31 : f32 to vector<8x128xf32>
    %59 = arith.addf %57, %58 : vector<8x128xf32>
    %cst_32 = arith.constant 5.000000e-01 : f32
    %60 = vector.broadcast %cst_32 : f32 to vector<8x128xf32>
    %61 = arith.mulf %60, %59 : vector<8x128xf32>
    %62 = arith.select %19, %57, %61 : vector<8x128xi1>, vector<8x128xf32>
    %63 = vector.extract_strided_slice %62 {offsets = [0, 0], sizes = [8, 32], strides = [1, 1]} : vector<8x128xf32> to vector<8x32xf32>
    %64 = vector.extract_strided_slice %62 {offsets = [0, 32], sizes = [8, 32], strides = [1, 1]} : vector<8x128xf32> to vector<8x32xf32>
    %65 = vector.extract_strided_slice %62 {offsets = [0, 64], sizes = [8, 32], strides = [1, 1]} : vector<8x128xf32> to vector<8x32xf32>
    %66 = vector.extract_strided_slice %62 {offsets = [0, 96], sizes = [8, 32], strides = [1, 1]} : vector<8x128xf32> to vector<8x32xf32>
    %67 = arith.mulf %64, %32 : vector<8x32xf32>
    %68 = arith.mulf %63, %65 : vector<8x32xf32>
    %69 = arith.addf %67, %68 : vector<8x32xf32>
    %70 = math.tanh %69 : vector<8x32xf32>
    %71 = arith.mulf %66, %70 : vector<8x32xf32>
    %72 = vector.extract_strided_slice %5 {offsets = [8, 0], sizes = [8, 128], strides = [1, 1]} : vector<64x128xf32> to vector<8x128xf32>
    %cst_33 = arith.constant dense<0.000000e+00> : vector<8x128xf32>
    %73 = tpu.matmul %51, %6, %cst_33 {dimension_numbers = #tpu.dot_dimension_numbers<[1], [0], [0], [1], [0, 0, 1, 1], [], []>} : vector<8x32xf32>, vector<32x128xf32>, vector<8x128xf32> -> vector<8x128xf32>
    %74 = arith.addf %72, %73 : vector<8x128xf32>
    %75 = arith.mulf %74, %24 : vector<8x128xf32>
    %76 = math.tanh %75 : vector<8x128xf32>
    %cst_34 = arith.constant 1.000000e+00 : f32
    %77 = vector.broadcast %cst_34 : f32 to vector<8x128xf32>
    %78 = arith.addf %76, %77 : vector<8x128xf32>
    %cst_35 = arith.constant 5.000000e-01 : f32
    %79 = vector.broadcast %cst_35 : f32 to vector<8x128xf32>
    %80 = arith.mulf %79, %78 : vector<8x128xf32>
    %81 = arith.select %19, %76, %80 : vector<8x128xi1>, vector<8x128xf32>
    %82 = vector.extract_strided_slice %81 {offsets = [0, 0], sizes = [8, 32], strides = [1, 1]} : vector<8x128xf32> to vector<8x32xf32>
    %83 = vector.extract_strided_slice %81 {offsets = [0, 32], sizes = [8, 32], strides = [1, 1]} : vector<8x128xf32> to vector<8x32xf32>
    %84 = vector.extract_strided_slice %81 {offsets = [0, 64], sizes = [8, 32], strides = [1, 1]} : vector<8x128xf32> to vector<8x32xf32>
    %85 = vector.extract_strided_slice %81 {offsets = [0, 96], sizes = [8, 32], strides = [1, 1]} : vector<8x128xf32> to vector<8x32xf32>
    %86 = arith.mulf %83, %49 : vector<8x32xf32>
    %87 = arith.mulf %82, %84 : vector<8x32xf32>
    %88 = arith.addf %86, %87 : vector<8x32xf32>
    %89 = math.tanh %88 : vector<8x32xf32>
    %90 = arith.mulf %85, %89 : vector<8x32xf32>
    %cst_36 = arith.constant dense<0.000000e+00> : vector<8x128xf32>
    %91 = tpu.matmul %90, %7, %cst_36 {dimension_numbers = #tpu.dot_dimension_numbers<[1], [0], [0], [1], [0, 0, 1, 1], [], []>} : vector<8x32xf32>, vector<32x128xf32>, vector<8x128xf32> -> vector<8x128xf32>
    %cst_37 = arith.constant dense<0.000000e+00> : vector<8x128xf32>
    %92 = tpu.matmul %71, %8, %cst_37 {dimension_numbers = #tpu.dot_dimension_numbers<[1], [0], [0], [1], [0, 0, 1, 1], [], []>} : vector<8x32xf32>, vector<32x128xf32>, vector<8x128xf32> -> vector<8x128xf32>
    %93 = arith.addf %91, %92 : vector<8x128xf32>
    %94 = arith.addf %93, %11 : vector<8x128xf32>
    %95 = arith.mulf %94, %24 : vector<8x128xf32>
    %96 = math.tanh %95 : vector<8x128xf32>
    %cst_38 = arith.constant 1.000000e+00 : f32
    %97 = vector.broadcast %cst_38 : f32 to vector<8x128xf32>
    %98 = arith.addf %96, %97 : vector<8x128xf32>
    %cst_39 = arith.constant 5.000000e-01 : f32
    %99 = vector.broadcast %cst_39 : f32 to vector<8x128xf32>
    %100 = arith.mulf %99, %98 : vector<8x128xf32>
    %101 = arith.select %19, %96, %100 : vector<8x128xi1>, vector<8x128xf32>
    %102 = vector.extract_strided_slice %101 {offsets = [0, 0], sizes = [8, 32], strides = [1, 1]} : vector<8x128xf32> to vector<8x32xf32>
    %103 = vector.extract_strided_slice %101 {offsets = [0, 32], sizes = [8, 32], strides = [1, 1]} : vector<8x128xf32> to vector<8x32xf32>
    %104 = vector.extract_strided_slice %101 {offsets = [0, 64], sizes = [8, 32], strides = [1, 1]} : vector<8x128xf32> to vector<8x32xf32>
    %105 = vector.extract_strided_slice %101 {offsets = [0, 96], sizes = [8, 32], strides = [1, 1]} : vector<8x128xf32> to vector<8x32xf32>
    %106 = arith.mulf %103, %69 : vector<8x32xf32>
    %107 = arith.mulf %102, %104 : vector<8x32xf32>
    %108 = arith.addf %106, %107 : vector<8x32xf32>
    %109 = math.tanh %108 : vector<8x32xf32>
    %110 = arith.mulf %105, %109 : vector<8x32xf32>
    %111 = vector.extract_strided_slice %5 {offsets = [16, 0], sizes = [8, 128], strides = [1, 1]} : vector<64x128xf32> to vector<8x128xf32>
    %cst_40 = arith.constant dense<0.000000e+00> : vector<8x128xf32>
    %112 = tpu.matmul %90, %6, %cst_40 {dimension_numbers = #tpu.dot_dimension_numbers<[1], [0], [0], [1], [0, 0, 1, 1], [], []>} : vector<8x32xf32>, vector<32x128xf32>, vector<8x128xf32> -> vector<8x128xf32>
    %113 = arith.addf %111, %112 : vector<8x128xf32>
    %114 = arith.mulf %113, %24 : vector<8x128xf32>
    %115 = math.tanh %114 : vector<8x128xf32>
    %cst_41 = arith.constant 1.000000e+00 : f32
    %116 = vector.broadcast %cst_41 : f32 to vector<8x128xf32>
    %117 = arith.addf %115, %116 : vector<8x128xf32>
    %cst_42 = arith.constant 5.000000e-01 : f32
    %118 = vector.broadcast %cst_42 : f32 to vector<8x128xf32>
    %119 = arith.mulf %118, %117 : vector<8x128xf32>
    %120 = arith.select %19, %115, %119 : vector<8x128xi1>, vector<8x128xf32>
    %121 = vector.extract_strided_slice %120 {offsets = [0, 0], sizes = [8, 32], strides = [1, 1]} : vector<8x128xf32> to vector<8x32xf32>
    %122 = vector.extract_strided_slice %120 {offsets = [0, 32], sizes = [8, 32], strides = [1, 1]} : vector<8x128xf32> to vector<8x32xf32>
    %123 = vector.extract_strided_slice %120 {offsets = [0, 64], sizes = [8, 32], strides = [1, 1]} : vector<8x128xf32> to vector<8x32xf32>
    %124 = vector.extract_strided_slice %120 {offsets = [0, 96], sizes = [8, 32], strides = [1, 1]} : vector<8x128xf32> to vector<8x32xf32>
    %125 = arith.mulf %122, %88 : vector<8x32xf32>
    %126 = arith.mulf %121, %123 : vector<8x32xf32>
    %127 = arith.addf %125, %126 : vector<8x32xf32>
    %128 = math.tanh %127 : vector<8x32xf32>
    %129 = arith.mulf %124, %128 : vector<8x32xf32>
    %cst_43 = arith.constant dense<0.000000e+00> : vector<8x128xf32>
    %130 = tpu.matmul %129, %7, %cst_43 {dimension_numbers = #tpu.dot_dimension_numbers<[1], [0], [0], [1], [0, 0, 1, 1], [], []>} : vector<8x32xf32>, vector<32x128xf32>, vector<8x128xf32> -> vector<8x128xf32>
    %cst_44 = arith.constant dense<0.000000e+00> : vector<8x128xf32>
    %131 = tpu.matmul %110, %8, %cst_44 {dimension_numbers = #tpu.dot_dimension_numbers<[1], [0], [0], [1], [0, 0, 1, 1], [], []>} : vector<8x32xf32>, vector<32x128xf32>, vector<8x128xf32> -> vector<8x128xf32>
    %132 = arith.addf %130, %131 : vector<8x128xf32>
    %133 = arith.addf %132, %11 : vector<8x128xf32>
    %134 = arith.mulf %133, %24 : vector<8x128xf32>
    %135 = math.tanh %134 : vector<8x128xf32>
    %cst_45 = arith.constant 1.000000e+00 : f32
    %136 = vector.broadcast %cst_45 : f32 to vector<8x128xf32>
    %137 = arith.addf %135, %136 : vector<8x128xf32>
    %cst_46 = arith.constant 5.000000e-01 : f32
    %138 = vector.broadcast %cst_46 : f32 to vector<8x128xf32>
    %139 = arith.mulf %138, %137 : vector<8x128xf32>
    %140 = arith.select %19, %135, %139 : vector<8x128xi1>, vector<8x128xf32>
    %141 = vector.extract_strided_slice %140 {offsets = [0, 0], sizes = [8, 32], strides = [1, 1]} : vector<8x128xf32> to vector<8x32xf32>
    %142 = vector.extract_strided_slice %140 {offsets = [0, 32], sizes = [8, 32], strides = [1, 1]} : vector<8x128xf32> to vector<8x32xf32>
    %143 = vector.extract_strided_slice %140 {offsets = [0, 64], sizes = [8, 32], strides = [1, 1]} : vector<8x128xf32> to vector<8x32xf32>
    %144 = vector.extract_strided_slice %140 {offsets = [0, 96], sizes = [8, 32], strides = [1, 1]} : vector<8x128xf32> to vector<8x32xf32>
    %145 = arith.mulf %142, %108 : vector<8x32xf32>
    %146 = arith.mulf %141, %143 : vector<8x32xf32>
    %147 = arith.addf %145, %146 : vector<8x32xf32>
    %148 = math.tanh %147 : vector<8x32xf32>
    %149 = arith.mulf %144, %148 : vector<8x32xf32>
    %150 = vector.extract_strided_slice %5 {offsets = [24, 0], sizes = [8, 128], strides = [1, 1]} : vector<64x128xf32> to vector<8x128xf32>
    %cst_47 = arith.constant dense<0.000000e+00> : vector<8x128xf32>
    %151 = tpu.matmul %129, %6, %cst_47 {dimension_numbers = #tpu.dot_dimension_numbers<[1], [0], [0], [1], [0, 0, 1, 1], [], []>} : vector<8x32xf32>, vector<32x128xf32>, vector<8x128xf32> -> vector<8x128xf32>
    %152 = arith.addf %150, %151 : vector<8x128xf32>
    %153 = arith.mulf %152, %24 : vector<8x128xf32>
    %154 = math.tanh %153 : vector<8x128xf32>
    %cst_48 = arith.constant 1.000000e+00 : f32
    %155 = vector.broadcast %cst_48 : f32 to vector<8x128xf32>
    %156 = arith.addf %154, %155 : vector<8x128xf32>
    %cst_49 = arith.constant 5.000000e-01 : f32
    %157 = vector.broadcast %cst_49 : f32 to vector<8x128xf32>
    %158 = arith.mulf %157, %156 : vector<8x128xf32>
    %159 = arith.select %19, %154, %158 : vector<8x128xi1>, vector<8x128xf32>
    %160 = vector.extract_strided_slice %159 {offsets = [0, 0], sizes = [8, 32], strides = [1, 1]} : vector<8x128xf32> to vector<8x32xf32>
    %161 = vector.extract_strided_slice %159 {offsets = [0, 32], sizes = [8, 32], strides = [1, 1]} : vector<8x128xf32> to vector<8x32xf32>
    %162 = vector.extract_strided_slice %159 {offsets = [0, 64], sizes = [8, 32], strides = [1, 1]} : vector<8x128xf32> to vector<8x32xf32>
    %163 = vector.extract_strided_slice %159 {offsets = [0, 96], sizes = [8, 32], strides = [1, 1]} : vector<8x128xf32> to vector<8x32xf32>
    %164 = arith.mulf %161, %127 : vector<8x32xf32>
    %165 = arith.mulf %160, %162 : vector<8x32xf32>
    %166 = arith.addf %164, %165 : vector<8x32xf32>
    %167 = math.tanh %166 : vector<8x32xf32>
    %168 = arith.mulf %163, %167 : vector<8x32xf32>
    %cst_50 = arith.constant dense<0.000000e+00> : vector<8x128xf32>
    %169 = tpu.matmul %168, %7, %cst_50 {dimension_numbers = #tpu.dot_dimension_numbers<[1], [0], [0], [1], [0, 0, 1, 1], [], []>} : vector<8x32xf32>, vector<32x128xf32>, vector<8x128xf32> -> vector<8x128xf32>
    %cst_51 = arith.constant dense<0.000000e+00> : vector<8x128xf32>
    %170 = tpu.matmul %149, %8, %cst_51 {dimension_numbers = #tpu.dot_dimension_numbers<[1], [0], [0], [1], [0, 0, 1, 1], [], []>} : vector<8x32xf32>, vector<32x128xf32>, vector<8x128xf32> -> vector<8x128xf32>
    %171 = arith.addf %169, %170 : vector<8x128xf32>
    %172 = arith.addf %171, %11 : vector<8x128xf32>
    %173 = arith.mulf %172, %24 : vector<8x128xf32>
    %174 = math.tanh %173 : vector<8x128xf32>
    %cst_52 = arith.constant 1.000000e+00 : f32
    %175 = vector.broadcast %cst_52 : f32 to vector<8x128xf32>
    %176 = arith.addf %174, %175 : vector<8x128xf32>
    %cst_53 = arith.constant 5.000000e-01 : f32
    %177 = vector.broadcast %cst_53 : f32 to vector<8x128xf32>
    %178 = arith.mulf %177, %176 : vector<8x128xf32>
    %179 = arith.select %19, %174, %178 : vector<8x128xi1>, vector<8x128xf32>
    %180 = vector.extract_strided_slice %179 {offsets = [0, 0], sizes = [8, 32], strides = [1, 1]} : vector<8x128xf32> to vector<8x32xf32>
    %181 = vector.extract_strided_slice %179 {offsets = [0, 32], sizes = [8, 32], strides = [1, 1]} : vector<8x128xf32> to vector<8x32xf32>
    %182 = vector.extract_strided_slice %179 {offsets = [0, 64], sizes = [8, 32], strides = [1, 1]} : vector<8x128xf32> to vector<8x32xf32>
    %183 = vector.extract_strided_slice %179 {offsets = [0, 96], sizes = [8, 32], strides = [1, 1]} : vector<8x128xf32> to vector<8x32xf32>
    %184 = arith.mulf %181, %147 : vector<8x32xf32>
    %185 = arith.mulf %180, %182 : vector<8x32xf32>
    %186 = arith.addf %184, %185 : vector<8x32xf32>
    %187 = math.tanh %186 : vector<8x32xf32>
    %188 = arith.mulf %183, %187 : vector<8x32xf32>
    %189 = vector.extract_strided_slice %5 {offsets = [32, 0], sizes = [8, 128], strides = [1, 1]} : vector<64x128xf32> to vector<8x128xf32>
    %cst_54 = arith.constant dense<0.000000e+00> : vector<8x128xf32>
    %190 = tpu.matmul %168, %6, %cst_54 {dimension_numbers = #tpu.dot_dimension_numbers<[1], [0], [0], [1], [0, 0, 1, 1], [], []>} : vector<8x32xf32>, vector<32x128xf32>, vector<8x128xf32> -> vector<8x128xf32>
    %191 = arith.addf %189, %190 : vector<8x128xf32>
    %192 = arith.mulf %191, %24 : vector<8x128xf32>
    %193 = math.tanh %192 : vector<8x128xf32>
    %cst_55 = arith.constant 1.000000e+00 : f32
    %194 = vector.broadcast %cst_55 : f32 to vector<8x128xf32>
    %195 = arith.addf %193, %194 : vector<8x128xf32>
    %cst_56 = arith.constant 5.000000e-01 : f32
    %196 = vector.broadcast %cst_56 : f32 to vector<8x128xf32>
    %197 = arith.mulf %196, %195 : vector<8x128xf32>
    %198 = arith.select %19, %193, %197 : vector<8x128xi1>, vector<8x128xf32>
    %199 = vector.extract_strided_slice %198 {offsets = [0, 0], sizes = [8, 32], strides = [1, 1]} : vector<8x128xf32> to vector<8x32xf32>
    %200 = vector.extract_strided_slice %198 {offsets = [0, 32], sizes = [8, 32], strides = [1, 1]} : vector<8x128xf32> to vector<8x32xf32>
    %201 = vector.extract_strided_slice %198 {offsets = [0, 64], sizes = [8, 32], strides = [1, 1]} : vector<8x128xf32> to vector<8x32xf32>
    %202 = vector.extract_strided_slice %198 {offsets = [0, 96], sizes = [8, 32], strides = [1, 1]} : vector<8x128xf32> to vector<8x32xf32>
    %203 = arith.mulf %200, %166 : vector<8x32xf32>
    %204 = arith.mulf %199, %201 : vector<8x32xf32>
    %205 = arith.addf %203, %204 : vector<8x32xf32>
    %206 = math.tanh %205 : vector<8x32xf32>
    %207 = arith.mulf %202, %206 : vector<8x32xf32>
    %cst_57 = arith.constant dense<0.000000e+00> : vector<8x128xf32>
    %208 = tpu.matmul %207, %7, %cst_57 {dimension_numbers = #tpu.dot_dimension_numbers<[1], [0], [0], [1], [0, 0, 1, 1], [], []>} : vector<8x32xf32>, vector<32x128xf32>, vector<8x128xf32> -> vector<8x128xf32>
    %cst_58 = arith.constant dense<0.000000e+00> : vector<8x128xf32>
    %209 = tpu.matmul %188, %8, %cst_58 {dimension_numbers = #tpu.dot_dimension_numbers<[1], [0], [0], [1], [0, 0, 1, 1], [], []>} : vector<8x32xf32>, vector<32x128xf32>, vector<8x128xf32> -> vector<8x128xf32>
    %210 = arith.addf %208, %209 : vector<8x128xf32>
    %211 = arith.addf %210, %11 : vector<8x128xf32>
    %212 = arith.mulf %211, %24 : vector<8x128xf32>
    %213 = math.tanh %212 : vector<8x128xf32>
    %cst_59 = arith.constant 1.000000e+00 : f32
    %214 = vector.broadcast %cst_59 : f32 to vector<8x128xf32>
    %215 = arith.addf %213, %214 : vector<8x128xf32>
    %cst_60 = arith.constant 5.000000e-01 : f32
    %216 = vector.broadcast %cst_60 : f32 to vector<8x128xf32>
    %217 = arith.mulf %216, %215 : vector<8x128xf32>
    %218 = arith.select %19, %213, %217 : vector<8x128xi1>, vector<8x128xf32>
    %219 = vector.extract_strided_slice %218 {offsets = [0, 0], sizes = [8, 32], strides = [1, 1]} : vector<8x128xf32> to vector<8x32xf32>
    %220 = vector.extract_strided_slice %218 {offsets = [0, 32], sizes = [8, 32], strides = [1, 1]} : vector<8x128xf32> to vector<8x32xf32>
    %221 = vector.extract_strided_slice %218 {offsets = [0, 64], sizes = [8, 32], strides = [1, 1]} : vector<8x128xf32> to vector<8x32xf32>
    %222 = vector.extract_strided_slice %218 {offsets = [0, 96], sizes = [8, 32], strides = [1, 1]} : vector<8x128xf32> to vector<8x32xf32>
    %223 = arith.mulf %220, %186 : vector<8x32xf32>
    %224 = arith.mulf %219, %221 : vector<8x32xf32>
    %225 = arith.addf %223, %224 : vector<8x32xf32>
    %226 = math.tanh %225 : vector<8x32xf32>
    %227 = arith.mulf %222, %226 : vector<8x32xf32>
    %228 = vector.extract_strided_slice %5 {offsets = [40, 0], sizes = [8, 128], strides = [1, 1]} : vector<64x128xf32> to vector<8x128xf32>
    %cst_61 = arith.constant dense<0.000000e+00> : vector<8x128xf32>
    %229 = tpu.matmul %207, %6, %cst_61 {dimension_numbers = #tpu.dot_dimension_numbers<[1], [0], [0], [1], [0, 0, 1, 1], [], []>} : vector<8x32xf32>, vector<32x128xf32>, vector<8x128xf32> -> vector<8x128xf32>
    %230 = arith.addf %228, %229 : vector<8x128xf32>
    %231 = arith.mulf %230, %24 : vector<8x128xf32>
    %232 = math.tanh %231 : vector<8x128xf32>
    %cst_62 = arith.constant 1.000000e+00 : f32
    %233 = vector.broadcast %cst_62 : f32 to vector<8x128xf32>
    %234 = arith.addf %232, %233 : vector<8x128xf32>
    %cst_63 = arith.constant 5.000000e-01 : f32
    %235 = vector.broadcast %cst_63 : f32 to vector<8x128xf32>
    %236 = arith.mulf %235, %234 : vector<8x128xf32>
    %237 = arith.select %19, %232, %236 : vector<8x128xi1>, vector<8x128xf32>
    %238 = vector.extract_strided_slice %237 {offsets = [0, 0], sizes = [8, 32], strides = [1, 1]} : vector<8x128xf32> to vector<8x32xf32>
    %239 = vector.extract_strided_slice %237 {offsets = [0, 32], sizes = [8, 32], strides = [1, 1]} : vector<8x128xf32> to vector<8x32xf32>
    %240 = vector.extract_strided_slice %237 {offsets = [0, 64], sizes = [8, 32], strides = [1, 1]} : vector<8x128xf32> to vector<8x32xf32>
    %241 = vector.extract_strided_slice %237 {offsets = [0, 96], sizes = [8, 32], strides = [1, 1]} : vector<8x128xf32> to vector<8x32xf32>
    %242 = arith.mulf %239, %205 : vector<8x32xf32>
    %243 = arith.mulf %238, %240 : vector<8x32xf32>
    %244 = arith.addf %242, %243 : vector<8x32xf32>
    %245 = math.tanh %244 : vector<8x32xf32>
    %246 = arith.mulf %241, %245 : vector<8x32xf32>
    %cst_64 = arith.constant dense<0.000000e+00> : vector<8x128xf32>
    %247 = tpu.matmul %246, %7, %cst_64 {dimension_numbers = #tpu.dot_dimension_numbers<[1], [0], [0], [1], [0, 0, 1, 1], [], []>} : vector<8x32xf32>, vector<32x128xf32>, vector<8x128xf32> -> vector<8x128xf32>
    %cst_65 = arith.constant dense<0.000000e+00> : vector<8x128xf32>
    %248 = tpu.matmul %227, %8, %cst_65 {dimension_numbers = #tpu.dot_dimension_numbers<[1], [0], [0], [1], [0, 0, 1, 1], [], []>} : vector<8x32xf32>, vector<32x128xf32>, vector<8x128xf32> -> vector<8x128xf32>
    %249 = arith.addf %247, %248 : vector<8x128xf32>
    %250 = arith.addf %249, %11 : vector<8x128xf32>
    %251 = arith.mulf %250, %24 : vector<8x128xf32>
    %252 = math.tanh %251 : vector<8x128xf32>
    %cst_66 = arith.constant 1.000000e+00 : f32
    %253 = vector.broadcast %cst_66 : f32 to vector<8x128xf32>
    %254 = arith.addf %252, %253 : vector<8x128xf32>
    %cst_67 = arith.constant 5.000000e-01 : f32
    %255 = vector.broadcast %cst_67 : f32 to vector<8x128xf32>
    %256 = arith.mulf %255, %254 : vector<8x128xf32>
    %257 = arith.select %19, %252, %256 : vector<8x128xi1>, vector<8x128xf32>
    %258 = vector.extract_strided_slice %257 {offsets = [0, 0], sizes = [8, 32], strides = [1, 1]} : vector<8x128xf32> to vector<8x32xf32>
    %259 = vector.extract_strided_slice %257 {offsets = [0, 32], sizes = [8, 32], strides = [1, 1]} : vector<8x128xf32> to vector<8x32xf32>
    %260 = vector.extract_strided_slice %257 {offsets = [0, 64], sizes = [8, 32], strides = [1, 1]} : vector<8x128xf32> to vector<8x32xf32>
    %261 = vector.extract_strided_slice %257 {offsets = [0, 96], sizes = [8, 32], strides = [1, 1]} : vector<8x128xf32> to vector<8x32xf32>
    %262 = arith.mulf %259, %225 : vector<8x32xf32>
    %263 = arith.mulf %258, %260 : vector<8x32xf32>
    %264 = arith.addf %262, %263 : vector<8x32xf32>
    %265 = math.tanh %264 : vector<8x32xf32>
    %266 = arith.mulf %261, %265 : vector<8x32xf32>
    %267 = vector.extract_strided_slice %5 {offsets = [48, 0], sizes = [8, 128], strides = [1, 1]} : vector<64x128xf32> to vector<8x128xf32>
    %cst_68 = arith.constant dense<0.000000e+00> : vector<8x128xf32>
    %268 = tpu.matmul %246, %6, %cst_68 {dimension_numbers = #tpu.dot_dimension_numbers<[1], [0], [0], [1], [0, 0, 1, 1], [], []>} : vector<8x32xf32>, vector<32x128xf32>, vector<8x128xf32> -> vector<8x128xf32>
    %269 = arith.addf %267, %268 : vector<8x128xf32>
    %270 = arith.mulf %269, %24 : vector<8x128xf32>
    %271 = math.tanh %270 : vector<8x128xf32>
    %cst_69 = arith.constant 1.000000e+00 : f32
    %272 = vector.broadcast %cst_69 : f32 to vector<8x128xf32>
    %273 = arith.addf %271, %272 : vector<8x128xf32>
    %cst_70 = arith.constant 5.000000e-01 : f32
    %274 = vector.broadcast %cst_70 : f32 to vector<8x128xf32>
    %275 = arith.mulf %274, %273 : vector<8x128xf32>
    %276 = arith.select %19, %271, %275 : vector<8x128xi1>, vector<8x128xf32>
    %277 = vector.extract_strided_slice %276 {offsets = [0, 0], sizes = [8, 32], strides = [1, 1]} : vector<8x128xf32> to vector<8x32xf32>
    %278 = vector.extract_strided_slice %276 {offsets = [0, 32], sizes = [8, 32], strides = [1, 1]} : vector<8x128xf32> to vector<8x32xf32>
    %279 = vector.extract_strided_slice %276 {offsets = [0, 64], sizes = [8, 32], strides = [1, 1]} : vector<8x128xf32> to vector<8x32xf32>
    %280 = vector.extract_strided_slice %276 {offsets = [0, 96], sizes = [8, 32], strides = [1, 1]} : vector<8x128xf32> to vector<8x32xf32>
    %281 = arith.mulf %278, %244 : vector<8x32xf32>
    %282 = arith.mulf %277, %279 : vector<8x32xf32>
    %283 = arith.addf %281, %282 : vector<8x32xf32>
    %284 = math.tanh %283 : vector<8x32xf32>
    %285 = arith.mulf %280, %284 : vector<8x32xf32>
    %cst_71 = arith.constant dense<0.000000e+00> : vector<8x128xf32>
    %286 = tpu.matmul %285, %7, %cst_71 {dimension_numbers = #tpu.dot_dimension_numbers<[1], [0], [0], [1], [0, 0, 1, 1], [], []>} : vector<8x32xf32>, vector<32x128xf32>, vector<8x128xf32> -> vector<8x128xf32>
    %cst_72 = arith.constant dense<0.000000e+00> : vector<8x128xf32>
    %287 = tpu.matmul %266, %8, %cst_72 {dimension_numbers = #tpu.dot_dimension_numbers<[1], [0], [0], [1], [0, 0, 1, 1], [], []>} : vector<8x32xf32>, vector<32x128xf32>, vector<8x128xf32> -> vector<8x128xf32>
    %288 = arith.addf %286, %287 : vector<8x128xf32>
    %289 = arith.addf %288, %11 : vector<8x128xf32>
    %290 = arith.mulf %289, %24 : vector<8x128xf32>
    %291 = math.tanh %290 : vector<8x128xf32>
    %cst_73 = arith.constant 1.000000e+00 : f32
    %292 = vector.broadcast %cst_73 : f32 to vector<8x128xf32>
    %293 = arith.addf %291, %292 : vector<8x128xf32>
    %cst_74 = arith.constant 5.000000e-01 : f32
    %294 = vector.broadcast %cst_74 : f32 to vector<8x128xf32>
    %295 = arith.mulf %294, %293 : vector<8x128xf32>
    %296 = arith.select %19, %291, %295 : vector<8x128xi1>, vector<8x128xf32>
    %297 = vector.extract_strided_slice %296 {offsets = [0, 0], sizes = [8, 32], strides = [1, 1]} : vector<8x128xf32> to vector<8x32xf32>
    %298 = vector.extract_strided_slice %296 {offsets = [0, 32], sizes = [8, 32], strides = [1, 1]} : vector<8x128xf32> to vector<8x32xf32>
    %299 = vector.extract_strided_slice %296 {offsets = [0, 64], sizes = [8, 32], strides = [1, 1]} : vector<8x128xf32> to vector<8x32xf32>
    %300 = vector.extract_strided_slice %296 {offsets = [0, 96], sizes = [8, 32], strides = [1, 1]} : vector<8x128xf32> to vector<8x32xf32>
    %301 = arith.mulf %298, %264 : vector<8x32xf32>
    %302 = arith.mulf %297, %299 : vector<8x32xf32>
    %303 = arith.addf %301, %302 : vector<8x32xf32>
    %304 = math.tanh %303 : vector<8x32xf32>
    %305 = arith.mulf %300, %304 : vector<8x32xf32>
    %306 = vector.extract_strided_slice %5 {offsets = [56, 0], sizes = [8, 128], strides = [1, 1]} : vector<64x128xf32> to vector<8x128xf32>
    %cst_75 = arith.constant dense<0.000000e+00> : vector<8x128xf32>
    %307 = tpu.matmul %285, %6, %cst_75 {dimension_numbers = #tpu.dot_dimension_numbers<[1], [0], [0], [1], [0, 0, 1, 1], [], []>} : vector<8x32xf32>, vector<32x128xf32>, vector<8x128xf32> -> vector<8x128xf32>
    %308 = arith.addf %306, %307 : vector<8x128xf32>
    %309 = arith.mulf %308, %24 : vector<8x128xf32>
    %310 = math.tanh %309 : vector<8x128xf32>
    %cst_76 = arith.constant 1.000000e+00 : f32
    %311 = vector.broadcast %cst_76 : f32 to vector<8x128xf32>
    %312 = arith.addf %310, %311 : vector<8x128xf32>
    %cst_77 = arith.constant 5.000000e-01 : f32
    %313 = vector.broadcast %cst_77 : f32 to vector<8x128xf32>
    %314 = arith.mulf %313, %312 : vector<8x128xf32>
    %315 = arith.select %19, %310, %314 : vector<8x128xi1>, vector<8x128xf32>
    %316 = vector.extract_strided_slice %315 {offsets = [0, 0], sizes = [8, 32], strides = [1, 1]} : vector<8x128xf32> to vector<8x32xf32>
    %317 = vector.extract_strided_slice %315 {offsets = [0, 32], sizes = [8, 32], strides = [1, 1]} : vector<8x128xf32> to vector<8x32xf32>
    %318 = vector.extract_strided_slice %315 {offsets = [0, 64], sizes = [8, 32], strides = [1, 1]} : vector<8x128xf32> to vector<8x32xf32>
    %319 = vector.extract_strided_slice %315 {offsets = [0, 96], sizes = [8, 32], strides = [1, 1]} : vector<8x128xf32> to vector<8x32xf32>
    %320 = arith.mulf %317, %283 : vector<8x32xf32>
    %321 = arith.mulf %316, %318 : vector<8x32xf32>
    %322 = arith.addf %320, %321 : vector<8x32xf32>
    %323 = math.tanh %322 : vector<8x32xf32>
    %324 = arith.mulf %319, %323 : vector<8x32xf32>
    %cst_78 = arith.constant dense<0.000000e+00> : vector<8x128xf32>
    %325 = tpu.matmul %324, %7, %cst_78 {dimension_numbers = #tpu.dot_dimension_numbers<[1], [0], [0], [1], [0, 0, 1, 1], [], []>} : vector<8x32xf32>, vector<32x128xf32>, vector<8x128xf32> -> vector<8x128xf32>
    %cst_79 = arith.constant dense<0.000000e+00> : vector<8x128xf32>
    %326 = tpu.matmul %305, %8, %cst_79 {dimension_numbers = #tpu.dot_dimension_numbers<[1], [0], [0], [1], [0, 0, 1, 1], [], []>} : vector<8x32xf32>, vector<32x128xf32>, vector<8x128xf32> -> vector<8x128xf32>
    %327 = arith.addf %325, %326 : vector<8x128xf32>
    %328 = arith.addf %327, %11 : vector<8x128xf32>
    %329 = arith.mulf %328, %24 : vector<8x128xf32>
    %330 = math.tanh %329 : vector<8x128xf32>
    %cst_80 = arith.constant 1.000000e+00 : f32
    %331 = vector.broadcast %cst_80 : f32 to vector<8x128xf32>
    %332 = arith.addf %330, %331 : vector<8x128xf32>
    %cst_81 = arith.constant 5.000000e-01 : f32
    %333 = vector.broadcast %cst_81 : f32 to vector<8x128xf32>
    %334 = arith.mulf %333, %332 : vector<8x128xf32>
    %335 = arith.select %19, %330, %334 : vector<8x128xi1>, vector<8x128xf32>
    %336 = vector.extract_strided_slice %335 {offsets = [0, 0], sizes = [8, 32], strides = [1, 1]} : vector<8x128xf32> to vector<8x32xf32>
    %337 = vector.extract_strided_slice %335 {offsets = [0, 32], sizes = [8, 32], strides = [1, 1]} : vector<8x128xf32> to vector<8x32xf32>
    %338 = vector.extract_strided_slice %335 {offsets = [0, 64], sizes = [8, 32], strides = [1, 1]} : vector<8x128xf32> to vector<8x32xf32>
    %339 = vector.extract_strided_slice %335 {offsets = [0, 96], sizes = [8, 32], strides = [1, 1]} : vector<8x128xf32> to vector<8x32xf32>
    %340 = arith.mulf %337, %303 : vector<8x32xf32>
    %341 = arith.mulf %336, %338 : vector<8x32xf32>
    %342 = arith.addf %340, %341 : vector<8x32xf32>
    %343 = math.tanh %342 : vector<8x32xf32>
    %344 = arith.mulf %339, %343 : vector<8x32xf32>
    %c0_82 = arith.constant 0 : index
    %c0_83 = arith.constant 0 : index
    %345 = vector.load %arg7[%c0_82, %c0_83] : memref<1x32xf32, #tpu.memory_space<vmem>>, vector<1x32xf32>
    %346 = vector.broadcast %345 : vector<1x32xf32> to vector<8x32xf32>
    %347 = arith.mulf %344, %346 : vector<8x32xf32>
    %cst_84 = arith.constant dense<0.000000e+00> : vector<8xf32>
    %348 = vector.multi_reduction <add>, %347, %cst_84 [1] : vector<8x32xf32> to vector<8xf32>
    %349 = vector.shape_cast %348 : vector<8xf32> to vector<8x1xf32>
    %c0_85 = arith.constant 0 : index
    %c0_86 = arith.constant 0 : index
    %350 = vector.load %arg8[%c0_85, %c0_86] : memref<1x1xf32, #tpu.memory_space<vmem>>, vector<1x1xf32>
    %351 = vector.broadcast %350 : vector<1x1xf32> to vector<8x1xf32>
    %352 = arith.addf %349, %351 : vector<8x1xf32>
    %cst_87 = arith.constant 5.000000e-01 : f32
    %353 = vector.broadcast %cst_87 : f32 to vector<8x1xf32>
    %354 = arith.mulf %353, %352 : vector<8x1xf32>
    %355 = math.tanh %354 : vector<8x1xf32>
    %cst_88 = arith.constant 1.000000e+00 : f32
    %356 = vector.broadcast %cst_88 : f32 to vector<8x1xf32>
    %357 = arith.addf %355, %356 : vector<8x1xf32>
    %cst_89 = arith.constant 5.000000e-01 : f32
    %358 = vector.broadcast %cst_89 : f32 to vector<8x1xf32>
    %359 = arith.mulf %358, %357 : vector<8x1xf32>
    %c0_90 = arith.constant 0 : index
    %c0_91 = arith.constant 0 : index
    %360 = vector.load %arg11[%c0_90, %c0_91] : memref<8x1xf32, #tpu.memory_space<vmem>>, vector<8x1xf32>
    tpu.vector_store %arg11[%c0_90, %c0_91], %359 {strides = array<i32>} : memref<8x1xf32, #tpu.memory_space<vmem>>, vector<8x1xf32>,
    %c0_92 = arith.constant 0 : index
    %c0_93 = arith.constant 0 : index
    %c0_94 = arith.constant 0 : index
    %361 = vector.load %arg12[%c0_92, %c0_93, %c0_94] : memref<2x8x32xf32, #tpu.memory_space<vmem>>, vector<1x8x32xf32>
    %362 = vector.shape_cast %361 : vector<1x8x32xf32> to vector<8x32xf32>
    %363 = vector.shape_cast %324 : vector<8x32xf32> to vector<1x8x32xf32>
    tpu.vector_store %arg12[%c0_92, %c0_93, %c0_94], %363 {strides = array<i32>} : memref<2x8x32xf32, #tpu.memory_space<vmem>>, vector<1x8x32xf32>,
    %c1_95 = arith.constant 1 : index
    %c0_96 = arith.constant 0 : index
    %c0_97 = arith.constant 0 : index
    %364 = vector.load %arg12[%c1_95, %c0_96, %c0_97] : memref<2x8x32xf32, #tpu.memory_space<vmem>>, vector<1x8x32xf32>
    %365 = vector.shape_cast %364 : vector<1x8x32xf32> to vector<8x32xf32>
    %366 = vector.shape_cast %344 : vector<8x32xf32> to vector<1x8x32xf32>
    tpu.vector_store %arg12[%c1_95, %c0_96, %c0_97], %366 {strides = array<i32>} : memref<2x8x32xf32, #tpu.memory_space<vmem>>, vector<1x8x32xf32>,
    %c0_98 = arith.constant 0 : index
    %c0_99 = arith.constant 0 : index
    %c0_100 = arith.constant 0 : index
    %367 = vector.load %arg13[%c0_98, %c0_99, %c0_100] : memref<2x8x32xf32, #tpu.memory_space<vmem>>, vector<1x8x32xf32>
    %368 = vector.shape_cast %367 : vector<1x8x32xf32> to vector<8x32xf32>
    %369 = vector.shape_cast %322 : vector<8x32xf32> to vector<1x8x32xf32>
    tpu.vector_store %arg13[%c0_98, %c0_99, %c0_100], %369 {strides = array<i32>} : memref<2x8x32xf32, #tpu.memory_space<vmem>>, vector<1x8x32xf32>,
    %c1_101 = arith.constant 1 : index
    %c0_102 = arith.constant 0 : index
    %c0_103 = arith.constant 0 : index
    %370 = vector.load %arg13[%c1_101, %c0_102, %c0_103] : memref<2x8x32xf32, #tpu.memory_space<vmem>>, vector<1x8x32xf32>
    %371 = vector.shape_cast %370 : vector<1x8x32xf32> to vector<8x32xf32>
    %372 = vector.shape_cast %342 : vector<8x32xf32> to vector<1x8x32xf32>
    tpu.vector_store %arg13[%c1_101, %c0_102, %c0_103], %372 {strides = array<i32>} : memref<2x8x32xf32, #tpu.memory_space<vmem>>, vector<1x8x32xf32>,
    return
  }
}

</mosaic_0001>

<bundles_post_ra>
// kernel: sentiment_rnn_forward.1
= control target key start
LH: loop header
LB: loop body
LE: loop exit
PB: predicated region body
PF: predicated region fallthrough
CT: control target
= control target key end

     0   :  { %s1857_s0 = inlined_call_operand.vmem [shape: f32[64,32], index: 0, kind: input, shape index: {}]   ;;  %s1858_s1 = inlined_call_operand.vmem [shape: f32[32,128], index: 1, kind: input, shape index: {}]   ;;  %s1859_s2 = inlined_call_operand.vmem [shape: f32[32,128], index: 2, kind: input, shape index: {}]   ;;  %s1860_s3 = inlined_call_operand.vmem [shape: f32[1,128], index: 3, kind: input, shape index: {}]   ;;  %s1861_s4 = inlined_call_operand.vmem [shape: f32[32,128], index: 4, kind: input, shape index: {}]   ;;  %s1862_s5 = inlined_call_operand.vmem [shape: f32[32,128], index: 5, kind: input, shape index: {}]   ;;  %s1863_s6 = inlined_call_operand.vmem [shape: f32[1,128], index: 6, kind: input, shape index: {}]   ;;  %s1864_s7 = inlined_call_operand.vmem [shape: f32[1,32], index: 7, kind: input, shape index: {}]   ;;  %s1865_s8 = inlined_call_operand.<no memory space> [shape: f32[1,1], index: 8, kind: input, shape index: {}]   ;;  %s1866_s9 = inlined_call_operand.vmem [shape: f32[2,8,32], index: 9, kind: input, shape index: {}]   ;;  %s1867_s10 = inlined_call_operand.vmem [shape: f32[2,8,32], index: 10, kind: input, shape index: {}]   ;;  %s1868_s11 = inlined_call_operand.vmem [shape: f32[8,1], index: 11, kind: output, shape index: {0}]   ;;  %s1869_s12 = inlined_call_operand.hbm [shape: f32[2,8,32], index: 12, kind: output, shape index: {1}]   ;;  %s1870_s13 = inlined_call_operand.hbm [shape: f32[2,8,32], index: 13, kind: output, shape index: {2}]  }
   0x1   :  { %v19_v0 = vstv %s1865_s8 }
   0x2   :  { %20 = vst [vmem:[#allocation2] sm:$0x1] %v19_v0 }
   0x3   :  { %21 = vsyncpa [#allocation4], 0  ;;  %v56_v1 = vld [vmem:[%s1858_s1 + $0x18] sm:$0xff]  ;;  %v55_v2 = vld [vmem:[%s1858_s1 + $0x10] sm:$0xff]  ;;  %vm61_vm0 = vcmask 261120  }
   0x4   :  { %v1432_v3 = vld [vmem:[%s1859_s2 + $0x18] sm:$0xff]  ;;  %98 = vmatpush.msra.mxu0 %v56_v1  ;;  %v1438_v4 = vld [vmem:[%s1859_s2 + $0x10] sm:$0xff]  ;;  %v54_v5 = vld [vmem:[%s1858_s1 + $0x8] sm:$0xff] }
   0x5   :  { %172 = vmatpush.msra.mxu1 %v1432_v3  ;;  %v1446_v6 = vld [vmem:[%s1859_s2 + $0x8] sm:$0xff]  ;;  %v53_v7 = vld [vmem:[%s1858_s1] sm:$0xff] }
   0x6   :  { %99 = vmatpush.msra.mxu0 %v55_v2  ;;  %v1455_v8 = vld [vmem:[%s1859_s2] sm:$0xff] }
   0x7   :  { %173 = vmatpush.msra.mxu1 %v1438_v4  ;;  %v45_v9 = vld [vmem:[%s1857_s0] sm:$0xff] }
   0x8   :  { %100 = vmatpush.msra.mxu0 %v54_v5  ;;  %v151_v10 = vld [vmem:[%s1866_s9] sm:$0xff] }
   0x9   :  { %174 = vmatpush.msra.mxu1 %v1446_v6 }
   0xa   :  { %22 = vsyncpa [#allocation6], 0  ;;  %101 = vmatpush.msra.mxu0 %v53_v7  ;;  %v143_v11 = vlaneseq  ;;  %v1478_v13 = vld [vmem:[%s1860_s3] ss:$0 sm:$0xff]  ;;  %v1342_v18 = vmov 0.5   ;;  %s1343_s3 = smov 64  }
   0xb   :  { %175 = vmatpush.msra.mxu1 %v1455_v8  ;;  %1178 = vmatmul.msk.f32.vlgmr.msra.gmra.mxu0 %vm61_vm0, %v45_v9  ;;  %v152_v26 = vld [vmem:[%s1867_s10] sm:$0xff]  ;;  %s1344_s14 = smov 32   ;;  %v1505_v34 = vld [vmem:[%s1862_s5 + $0x18] sm:$0xff]  ;;  %v1515_v36 = vld [vmem:[%s1862_s5 + $0x10] sm:$0xff]  ;;  %s1345_s27 = smov 96   ;;  %vm1117_vm4 = vcmask 7168  }
   0xc   :  { %1188 = vmatmul.msk.f32.vlgmr.msra.gmra.mxu1 %vm61_vm0, %v151_v10  ;;  %v144_v12 = vand.u32 127, %v143_v11  ;;  %v1510_v35 = vld [vmem:[%s1861_s4 + $0x18] sm:$0xff]  ;;  %222 = vmatpush.msra.mxu2 %v1505_v34  ;;  %v1522_v37 = vld [vmem:[%s1861_s4 + $0x10] sm:$0xff]  ;;  %v1527_v38 = vld [vmem:[%s1862_s5 + $0x8] sm:$0xff]  ;;  %s1146_s2 = sshll.u32 %s1869_s12, 4  ;;  %s1348_s29 = smov 8   ;;  %s1147_s2 = int_to_ptr.hbm [resolvable:$true] %s1146_s2 }
   0xd   :  { %294 = vmatpush.msrb.mxu1 %v1432_v3  ;;  %247 = vmatpush.msra.mxu3 %v1510_v35  ;;  %v1532_v39 = vld [vmem:[%s1861_s4 + $0x8] sm:$0xff]  ;;  %v1543_v41 = vld [vmem:[%s1862_s5] sm:$0xff] }
   0xe   :  { %vm145_vm1 = vcmp.ge.s32.totalorder %v144_v12, 64  ;;  %vm146_vm2 = vcmp.lt.s32.totalorder %v144_v12, 96  ;;  %v46_v40 = vld [vmem:[%s1857_s0 + $0x8] sm:$0xff]  ;;  %223 = vmatpush.msra.mxu2 %v1515_v36  ;;  %v1548_v42 = vld [vmem:[%s1861_s4] sm:$0xff]  ;;  %s1349_s4 = smov [#allocation5]  }
   0xf   :  { %295 = vmatpush.msrb.mxu1 %v1438_v4  ;;  %vm1480_vm3 = vmand %vm145_vm1, %vm146_vm2  ;;  %248 = vmatpush.msra.mxu3 %v1522_v37  ;;  %v1186_v45 = vld [vmem:[%s1866_s9 + $0x8] sm:$0xff]  ;;  %v1590_v54 = vld [vmem:[%s1863_s6] ss:$0 sm:$0xff]  ;;  %s1157_s5 = sshll.u32 %s1349_s4, 4  ;;  %s1159_s9 = sshll.u32 %s1870_s13, 4  ;;  %s1158_s5 = int_to_ptr.vmem [resolvable:$true] %s1157_s5  ;;  %s1160_s9 = int_to_ptr.hbm [resolvable:$true] %s1159_s9 }
  0x10   :  { %v1487_v19 = vsel %vm1480_vm3, 1.0, %v1342_v18  ;;  %224 = vmatpush.msra.mxu2 %v1527_v38  ;;  %v1187_v46 = vld [vmem:[%s1867_s10 + $0x8] sm:$0xff] }
  0x11   :  { %296 = vmatpush.msrb.mxu1 %v1446_v6  ;;  %249 = vmatpush.msra.mxu3 %v1532_v39 }
  0x12   :  { %225 = vmatpush.msra.mxu2 %v1543_v41 }
  0x13   :  { %297 = vmatpush.msrb.mxu1 %v1455_v8  ;;  %1179 = vmatmul.msk.f32.gmra.mxu0 %vm61_vm0, %v46_v40 }
  0x14   :  { %250 = vmatpush.msra.mxu3 %v1548_v42  ;;  %342 = vmatpush.msrb.mxu2 %v1505_v34 }
  0x15   :  { %410 = vmatpush.msra.mxu1 %v1432_v3  ;;  %1189 = vmatmul.msk.f32.vlgmr.msra.gmra.mxu2 %vm61_vm0, %v1186_v45 }
  0x16   :  { %367 = vmatpush.msrb.mxu3 %v1510_v35  ;;  %343 = vmatpush.msrb.mxu2 %v1515_v36 }
  0x17   :  { %411 = vmatpush.msra.mxu1 %v1438_v4 }
  0x18   :  { %368 = vmatpush.msrb.mxu3 %v1522_v37  ;;  %344 = vmatpush.msrb.mxu2 %v1527_v38 }
  0x19   :  { %412 = vmatpush.msra.mxu1 %v1446_v6 }
  0x1a   :  { %369 = vmatpush.msrb.mxu3 %v1532_v39  ;;  %345 = vmatpush.msrb.mxu2 %v1543_v41 }
  0x1b   :  { %413 = vmatpush.msra.mxu1 %v1455_v8 }
  0x1c   :  { %370 = vmatpush.msrb.mxu3 %v1548_v42  ;;  %458 = vmatpush.msra.mxu2 %v1505_v34 }
  0x1e   :  { %459 = vmatpush.msra.mxu2 %v1515_v36 }
  0x20   :  { %460 = vmatpush.msra.mxu2 %v1527_v38 }
  0x22   :  { %461 = vmatpush.msra.mxu2 %v1543_v41 }
  0x88   :  { %v103_v15 = vpop.f32.mrf.mxu0 }
  0x89   :  { %v177_v16 = vpop.f32.mrf.mxu1  ;;  %v104_v17 = vadd.f32 %v1478_v13, %v103_v15 }
  0x8b   :  { %v180_v20 = vadd.f32 %v177_v16, %v104_v17 }
  0x8d   :  { %v181_v21 = vmul.f32 %v180_v20, %v1487_v19 }
  0x8f   :  { %1224 = vtanh.f32 %v181_v21 }
  0x90   :  { %v106_v48 = vpop.f32.mrf.mxu0 }
  0x91   :  { %v107_v49 = vadd.f32 %v1478_v13, %v106_v48 }
  0x95   :  { %v1225_v22 = vpop.eup %1224 }
  0x96   :  { %v183_v23 = vadd.f32 1.0, %v1225_v22 }
  0x98   :  { %v184_v24 = vmul.f32 0.5, %v183_v23  ;;  %v227_v53 = vpop.f32.mrf.mxu2 }
  0x9a   :  { %v185_v25 = vsel %vm1480_vm3, %v1225_v22, %v184_v24 }
  0x9b   :  { %192 = vrot.lane.b32.xlu0 %v185_v25, %s1343_s3 }
  0xa3   :  { %187 = vrot.lane.b32.xlu0 %v152_v26, %s1344_s14 }
 0x10d   :  { %v193_v27 = vpop.permute.xlu0 %192 }
 0x10e   :  { %v195_v28 = vmul.f32 %v193_v27, %v185_v25  ;;  %v47_v27 = vld [vmem:[%s1857_s0 + $0x10] sm:$0xff] }
 0x10f   :  { %1180 = vmatmul.msk.f32.gmra.mxu0 %vm61_vm0, %v47_v27 }
 0x110   :  { %197 = vrot.lane.b32.xlu1 %v195_v28, %s1344_s14 }
 0x115   :  { %v188_v29 = vpop.permute.xlu0 %187 }
 0x116   :  { %v190_v30 = vmul.f32 %v188_v29, %v185_v25 }
 0x182   :  { %v198_v31 = vpop.permute.xlu1 %197 }
 0x183   :  { %v1498_v32 = vadd.f32 %v198_v31, %v190_v30 }
 0x185   :  { %1226 = vtanh.f32 %v1498_v32 }
 0x18b   :  { %v1227_v33 = vpop.eup %1226 }
 0x18c   :  { %203 = vrot.lane.b32.xlu1 %v1227_v33, %s1343_s3  ;;  %v109_v30 = vpop.f32.mrf.mxu0 }
 0x18d   :  { %v110_v31 = vadd.f32 %v1478_v13, %v109_v30 }
 0x194   :  { %262 = vrot.lane.b32.xlu1 %v1187_v46, %s1344_s14 }
 0x1fe   :  { %v204_v43 = vpop.permute.xlu1 %203 }
 0x1ff   :  { %v206_v44 = vmul.f32 %v204_v43, %v185_v25 }
 0x201   :  { %231 = vrot.lane.b32.xlu2 %v206_v44, %s1344_s14 }
 0x206   :  { %v263_v11 = vpop.permute.xlu1 %262 }
 0x25b   :  { %v232_v47 = vpop.permute.xlu2 %231 }
 0x25c   :  { %1190 = vmatmul.msk.f32.vlgmr.msra.gmra.mxu3 %vm61_vm0, %v232_v47  ;;  %1191 = vmatmul.msk.f32.vlgmr.msrb.gmra.mxu1 %vm61_vm0, %v232_v47 }
 0x25d   :  { %483 = vmatpush.msra.mxu3 %v1510_v35  ;;  %526 = vmatpush.msrb.mxu1 %v1432_v3 }
 0x25f   :  { %484 = vmatpush.msra.mxu3 %v1522_v37  ;;  %527 = vmatpush.msrb.mxu1 %v1438_v4 }
 0x261   :  { %485 = vmatpush.msra.mxu3 %v1532_v39  ;;  %528 = vmatpush.msrb.mxu1 %v1446_v6 }
 0x263   :  { %486 = vmatpush.msra.mxu3 %v1548_v42  ;;  %529 = vmatpush.msrb.mxu1 %v1455_v8 }
 0x2d9   :  { %v299_v50 = vpop.f32.mrf.mxu1 }
 0x2da   :  { %v302_v51 = vadd.f32 %v299_v50, %v107_v49 }
 0x2dc   :  { %v303_v52 = vmul.f32 %v302_v51, %v1487_v19 }
 0x2de   :  { %1228 = vtanh.f32 %v303_v52 }
 0x2df   :  { %v252_v55 = vpop.f32.mrf.mxu3 }
 0x2e0   :  { %v253_v56 = vadd.f32 %v252_v55, %v227_v53 }
 0x2e2   :  { %v255_v57 = vadd.f32 %v1590_v54, %v253_v56 }
 0x2e4   :  { %v1229_v58 = vpop.eup %1228  ;;  %v256_v59 = vmul.f32 %v255_v57, %v1487_v19 }
 0x2e5   :  { %v305_v60 = vadd.f32 1.0, %v1229_v58 }
 0x2e6   :  { %1230 = vtanh.f32 %v256_v59 }
 0x2e7   :  { %v306_v61 = vmul.f32 0.5, %v305_v60 }
 0x2e9   :  { %v307_v62 = vsel %vm1480_vm3, %v1229_v58, %v306_v61 }
 0x2ea   :  { %310 = vrot.lane.b32.xlu0 %v307_v62, %s1343_s3  ;;  %v308_v18 = vmul.f32 %v307_v62, %v1498_v32 }
 0x2ec   :  { %v1231_v63 = vpop.eup %1230 }
 0x2ed   :  { %v258_v0 = vadd.f32 1.0, %v1231_v63 }
 0x2ef   :  { %v259_v1 = vmul.f32 0.5, %v258_v0 }
 0x2f1   :  { %v260_v2 = vsel %vm1480_vm3, %v1231_v63, %v259_v1 }
 0x2f2   :  { %267 = vrot.lane.b32.xlu2 %v260_v2, %s1343_s3  ;;  %v265_v12 = vmul.f32 %v263_v11, %v260_v2 }
 0x34c   :  { %v268_v5 = vpop.permute.xlu2 %267 }
 0x34d   :  { %v270_v7 = vmul.f32 %v268_v5, %v260_v2 }
 0x34f   :  { %272 = vrot.lane.b32.xlu2 %v270_v7, %s1344_s14 }
 0x35c   :  { %v311_v9 = vpop.permute.xlu0 %310 }
 0x35d   :  { %v313_v10 = vmul.f32 %v311_v9, %v307_v62 }
 0x35f   :  { %315 = vrot.lane.b32.xlu0 %v313_v10, %s1344_s14 }
 0x3a9   :  { %v273_v15 = vpop.permute.xlu2 %272 }
 0x3aa   :  { %v1602_v16 = vadd.f32 %v273_v15, %v265_v12  ;;  %v48_v15 = vld [vmem:[%s1857_s0 + $0x18] sm:$0xff] }
 0x3ab   :  { %1181 = vmatmul.msk.f32.gmra.mxu0 %vm61_vm0, %v48_v15 }
 0x3ac   :  { %1232 = vtanh.f32 %v1602_v16 }
 0x3b2   :  { %v1233_v17 = vpop.eup %1232 }
 0x3b3   :  { %278 = vrot.lane.b32.xlu1 %v1233_v17, %s1343_s3 }
 0x3d1   :  { %v316_v20 = vpop.permute.xlu0 %315 }
 0x3d2   :  { %v318_v21 = vadd.f32 %v316_v20, %v308_v18 }
 0x3d4   :  { %1234 = vtanh.f32 %v318_v21 }
 0x3da   :  { %v1235_v22 = vpop.eup %1234 }
 0x3db   :  { %321 = vrot.lane.b32.xlu2 %v1235_v22, %s1343_s3 }
 0x425   :  { %v279_v23 = vpop.permute.xlu1 %278 }
 0x426   :  { %v281_v24 = vmul.f32 %v279_v23, %v260_v2 }
 0x428   :  { %326 = vrot.lane.b32.xlu0 %v281_v24, %s1344_s14  ;;  %v112_v18 = vpop.f32.mrf.mxu0 }
 0x429   :  { %v113_v20 = vadd.f32 %v1478_v13, %v112_v18 }
 0x435   :  { %v322_v25 = vpop.permute.xlu2 %321 }
 0x436   :  { %v324_v26 = vmul.f32 %v322_v25, %v307_v62 }
 0x438   :  { %351 = vrot.lane.b32.xlu1 %v324_v26, %s1344_s14 }
 0x49a   :  { %v327_v28 = vpop.permute.xlu0 %326 }
 0x49b   :  { %1192 = vmatmul.msk.f32.vlgmr.msrb.gmra.mxu2 %vm61_vm0, %v327_v28 }
 0x49c   :  { %574 = vmatpush.msrb.mxu2 %v1505_v34 }
 0x49e   :  { %575 = vmatpush.msrb.mxu2 %v1515_v36 }
 0x4a0   :  { %576 = vmatpush.msrb.mxu2 %v1527_v38 }
 0x4a2   :  { %577 = vmatpush.msrb.mxu2 %v1543_v41 }
 0x4aa   :  { %v352_v29 = vpop.permute.xlu1 %351 }
 0x4ab   :  { %1193 = vmatmul.msk.f32.vlgmr.msrb.gmra.mxu3 %vm61_vm0, %v352_v29  ;;  %1194 = vmatmul.msk.f32.vlgmr.msra.gmra.mxu1 %vm61_vm0, %v352_v29 }
 0x4ac   :  { %599 = vmatpush.msrb.mxu3 %v1510_v35  ;;  %642 = vmatpush.msra.mxu1 %v1432_v3 }
 0x4ae   :  { %600 = vmatpush.msrb.mxu3 %v1522_v37  ;;  %643 = vmatpush.msra.mxu1 %v1438_v4 }
 0x4b0   :  { %601 = vmatpush.msrb.mxu3 %v1532_v39  ;;  %644 = vmatpush.msra.mxu1 %v1446_v6 }
 0x4b2   :  { %602 = vmatpush.msrb.mxu3 %v1548_v42  ;;  %645 = vmatpush.msra.mxu1 %v1455_v8 }
 0x51e   :  { %v347_v43 = vpop.f32.mrf.mxu2 }
 0x528   :  { %v415_v32 = vpop.f32.mrf.mxu1 }
 0x529   :  { %v418_v33 = vadd.f32 %v415_v32, %v110_v31 }
 0x52b   :  { %v419_v40 = vmul.f32 %v418_v33, %v1487_v19 }
 0x52d   :  { %1236 = vtanh.f32 %v419_v40 }
 0x52e   :  { %v372_v44 = vpop.f32.mrf.mxu3 }
 0x52f   :  { %v373_v45 = vadd.f32 %v372_v44, %v347_v43 }
 0x531   :  { %v375_v46 = vadd.f32 %v1590_v54, %v373_v45 }
 0x533   :  { %v1237_v47 = vpop.eup %1236  ;;  %v376_v48 = vmul.f32 %v375_v46, %v1487_v19 }
 0x534   :  { %v421_v49 = vadd.f32 1.0, %v1237_v47 }
 0x535   :  { %1238 = vtanh.f32 %v376_v48 }
 0x536   :  { %v422_v50 = vmul.f32 0.5, %v421_v49 }
 0x538   :  { %v423_v51 = vsel %vm1480_vm3, %v1237_v47, %v422_v50 }
 0x539   :  { %426 = vrot.lane.b32.xlu0 %v423_v51, %s1343_s3  ;;  %v424_v61 = vmul.f32 %v423_v51, %v318_v21 }
 0x53b   :  { %v1239_v52 = vpop.eup %1238 }
 0x53c   :  { %v378_v53 = vadd.f32 1.0, %v1239_v52 }
 0x53e   :  { %v379_v55 = vmul.f32 0.5, %v378_v53 }
 0x540   :  { %v380_v56 = vsel %vm1480_vm3, %v1239_v52, %v379_v55 }
 0x541   :  { %383 = vrot.lane.b32.xlu2 %v380_v56, %s1343_s3  ;;  %v381_v0 = vmul.f32 %v380_v56, %v1602_v16 }
 0x59b   :  { %v384_v57 = vpop.permute.xlu2 %383 }
 0x59c   :  { %v386_v58 = vmul.f32 %v384_v57, %v380_v56 }
 0x59e   :  { %388 = vrot.lane.b32.xlu1 %v386_v58, %s1344_s14  ;;  %v49_v58 = vld [vmem:[%s1857_s0 + $0x20] sm:$0xff] }
 0x59f   :  { %1182 = vmatmul.msk.f32.gmra.mxu0 %vm61_vm0, %v49_v58 }
 0x5ab   :  { %v427_v59 = vpop.permute.xlu0 %426 }
 0x5ac   :  { %v429_v60 = vmul.f32 %v427_v59, %v423_v51 }
 0x5ae   :  { %431 = vrot.lane.b32.xlu2 %v429_v60, %s1344_s14 }
 0x608   :  { %v432_v62 = vpop.permute.xlu2 %431 }
 0x609   :  { %v1641_v63 = vadd.f32 %v432_v62, %v424_v61 }
 0x60b   :  { %1240 = vtanh.f32 %v1641_v63 }
 0x610   :  { %v389_v1 = vpop.permute.xlu1 %388 }
 0x611   :  { %v1241_v2 = vpop.eup %1240  ;;  %v1645_v5 = vadd.f32 %v389_v1, %v381_v0 }
 0x612   :  { %437 = vrot.lane.b32.xlu1 %v1241_v2, %s1343_s3 }
 0x613   :  { %1242 = vtanh.f32 %v1645_v5 }
 0x619   :  { %v1243_v7 = vpop.eup %1242 }
 0x61a   :  { %394 = vrot.lane.b32.xlu0 %v1243_v7, %s1343_s3 }
 0x61c   :  { %v115_v1 = vpop.f32.mrf.mxu0 }
 0x61d   :  { %v116_v2 = vadd.f32 %v1478_v13, %v115_v1 }
 0x684   :  { %v438_v9 = vpop.permute.xlu1 %437 }
 0x685   :  { %v440_v10 = vmul.f32 %v438_v9, %v423_v51 }
 0x687   :  { %467 = vrot.lane.b32.xlu0 %v440_v10, %s1344_s14 }
 0x68c   :  { %v395_v11 = vpop.permute.xlu0 %394 }
 0x68d   :  { %v397_v12 = vmul.f32 %v395_v11, %v380_v56 }
 0x68f   :  { %442 = vrot.lane.b32.xlu2 %v397_v12, %s1344_s14 }
 0x6e9   :  { %v443_v16 = vpop.permute.xlu2 %442 }
 0x6ea   :  { %1195 = vmatmul.msk.f32.vlgmr.msra.gmra.mxu2 %vm61_vm0, %v443_v16 }
 0x6eb   :  { %690 = vmatpush.msra.mxu2 %v1505_v34 }
 0x6ed   :  { %691 = vmatpush.msra.mxu2 %v1515_v36 }
 0x6ef   :  { %692 = vmatpush.msra.mxu2 %v1527_v38 }
 0x6f1   :  { %693 = vmatpush.msra.mxu2 %v1543_v41 }
 0x6f9   :  { %v468_v17 = vpop.permute.xlu0 %467 }
 0x6fa   :  { %1196 = vmatmul.msk.f32.vlgmr.msra.gmra.mxu3 %vm61_vm0, %v468_v17  ;;  %1197 = vmatmul.msk.f32.vlgmr.msrb.gmra.mxu1 %vm61_vm0, %v468_v17 }
 0x6fb   :  { %715 = vmatpush.msra.mxu3 %v1510_v35  ;;  %758 = vmatpush.msrb.mxu1 %v1432_v3 }
 0x6fd   :  { %716 = vmatpush.msra.mxu3 %v1522_v37  ;;  %759 = vmatpush.msrb.mxu1 %v1438_v4 }
 0x6ff   :  { %717 = vmatpush.msra.mxu3 %v1532_v39  ;;  %760 = vmatpush.msrb.mxu1 %v1446_v6 }
 0x701   :  { %718 = vmatpush.msra.mxu3 %v1548_v42  ;;  %761 = vmatpush.msrb.mxu1 %v1455_v8 }
 0x76d   :  { %v463_v24 = vpop.f32.mrf.mxu2 }
 0x777   :  { %v531_v21 = vpop.f32.mrf.mxu1 }
 0x778   :  { %v534_v22 = vadd.f32 %v531_v21, %v113_v20 }
 0x77a   :  { %v535_v23 = vmul.f32 %v534_v22, %v1487_v19 }
 0x77c   :  { %1244 = vtanh.f32 %v535_v23 }
 0x77d   :  { %v488_v25 = vpop.f32.mrf.mxu3 }
 0x77e   :  { %v489_v26 = vadd.f32 %v488_v25, %v463_v24 }
 0x780   :  { %v491_v27 = vadd.f32 %v1590_v54, %v489_v26 }
 0x782   :  { %v1245_v28 = vpop.eup %1244  ;;  %v492_v29 = vmul.f32 %v491_v27, %v1487_v19 }
 0x783   :  { %v537_v30 = vadd.f32 1.0, %v1245_v28 }
 0x784   :  { %1246 = vtanh.f32 %v492_v29 }
 0x785   :  { %v538_v31 = vmul.f32 0.5, %v537_v30 }
 0x787   :  { %v539_v32 = vsel %vm1480_vm3, %v1245_v28, %v538_v31 }
 0x788   :  { %542 = vrot.lane.b32.xlu2 %v539_v32, %s1343_s3  ;;  %v540_v49 = vmul.f32 %v539_v32, %v1641_v63 }
 0x78a   :  { %v1247_v33 = vpop.eup %1246 }
 0x78b   :  { %v494_v40 = vadd.f32 1.0, %v1247_v33 }
 0x78d   :  { %v495_v43 = vmul.f32 0.5, %v494_v40 }
 0x78f   :  { %v496_v44 = vsel %vm1480_vm3, %v1247_v33, %v495_v43 }
 0x790   :  { %499 = vrot.lane.b32.xlu1 %v496_v44, %s1343_s3  ;;  %v497_v53 = vmul.f32 %v496_v44, %v1645_v5 }
 0x7e2   :  { %v543_v45 = vpop.permute.xlu2 %542 }
 0x7e3   :  { %v545_v46 = vmul.f32 %v543_v45, %v539_v32 }
 0x7e5   :  { %547 = vrot.lane.b32.xlu1 %v545_v46, %s1344_s14 }
 0x802   :  { %v500_v47 = vpop.permute.xlu1 %499 }
 0x803   :  { %v502_v48 = vmul.f32 %v500_v47, %v496_v44 }
 0x805   :  { %504 = vrot.lane.b32.xlu0 %v502_v48, %s1344_s14  ;;  %v50_v48 = vld [vmem:[%s1857_s0 + $0x28] sm:$0xff] }
 0x806   :  { %1183 = vmatmul.msk.f32.gmra.mxu0 %vm61_vm0, %v50_v48 }
 0x857   :  { %v548_v50 = vpop.permute.xlu1 %547 }
 0x858   :  { %v1684_v51 = vadd.f32 %v548_v50, %v540_v49 }
 0x85a   :  { %1248 = vtanh.f32 %v1684_v51 }
 0x860   :  { %v1249_v52 = vpop.eup %1248 }
 0x861   :  { %553 = vrot.lane.b32.xlu0 %v1249_v52, %s1343_s3 }
 0x877   :  { %v505_v55 = vpop.permute.xlu0 %504 }
 0x878   :  { %v1689_v56 = vadd.f32 %v505_v55, %v497_v53 }
 0x87a   :  { %1250 = vtanh.f32 %v1689_v56 }
 0x880   :  { %v1251_v57 = vpop.eup %1250 }
 0x881   :  { %510 = vrot.lane.b32.xlu2 %v1251_v57, %s1343_s3 }
 0x8d3   :  { %v554_v59 = vpop.permute.xlu0 %553 }
 0x8d4   :  { %v556_v60 = vmul.f32 %v554_v59, %v539_v32 }
 0x8d6   :  { %583 = vrot.lane.b32.xlu2 %v556_v60, %s1344_s14 }
 0x8db   :  { %v511_v61 = vpop.permute.xlu2 %510 }
 0x8dc   :  { %v513_v62 = vmul.f32 %v511_v61, %v496_v44 }
 0x8de   :  { %558 = vrot.lane.b32.xlu1 %v513_v62, %s1344_s14 }
 0x930   :  { %v584_v63 = vpop.permute.xlu2 %583 }
 0x931   :  { %1199 = vmatmul.msk.f32.vlgmr.msrb.gmra.mxu3 %vm61_vm0, %v584_v63  ;;  %1200 = vmatmul.msk.f32.vlgmr.msra.gmra.mxu1 %vm61_vm0, %v584_v63 }
 0x932   :  { %831 = vmatpush.msrb.mxu3 %v1510_v35  ;;  %874 = vmatpush.msra.mxu1 %v1432_v3 }
 0x934   :  { %832 = vmatpush.msrb.mxu3 %v1522_v37  ;;  %875 = vmatpush.msra.mxu1 %v1438_v4 }
 0x936   :  { %833 = vmatpush.msrb.mxu3 %v1532_v39  ;;  %876 = vmatpush.msra.mxu1 %v1446_v6 }
 0x938   :  { %834 = vmatpush.msrb.mxu3 %v1548_v42  ;;  %877 = vmatpush.msra.mxu1 %v1455_v8 }
 0x950   :  { %v559_v0 = vpop.permute.xlu1 %558 }
 0x951   :  { %1198 = vmatmul.msk.f32.vlgmr.msrb.gmra.mxu2 %vm61_vm0, %v559_v0 }
 0x952   :  { %806 = vmatpush.msrb.mxu2 %v1505_v34 }
 0x954   :  { %807 = vmatpush.msrb.mxu2 %v1515_v36 }
 0x956   :  { %808 = vmatpush.msrb.mxu2 %v1527_v38 }
 0x958   :  { %809 = vmatpush.msrb.mxu2 %v1543_v41 }
 0x9ae   :  { %v647_v5 = vpop.f32.mrf.mxu1 }
 0x9af   :  { %v650_v7 = vadd.f32 %v647_v5, %v116_v2 }
 0x9b1   :  { %v651_v9 = vmul.f32 %v650_v7, %v1487_v19 }
 0x9b3   :  { %1252 = vtanh.f32 %v651_v9 }
 0x9b4   :  { %v604_v16 = vpop.f32.mrf.mxu3 }
 0x9b9   :  { %v1253_v10 = vpop.eup %1252 }
 0x9ba   :  { %v653_v11 = vadd.f32 1.0, %v1253_v10 }
 0x9bc   :  { %v654_v12 = vmul.f32 0.5, %v653_v11 }
 0x9be   :  { %v655_v15 = vsel %vm1480_vm3, %v1253_v10, %v654_v12 }
 0x9bf   :  { %658 = vrot.lane.b32.xlu1 %v655_v15, %s1343_s3  ;;  %v656_v30 = vmul.f32 %v655_v15, %v1684_v51 }
 0x9d4   :  { %v579_v17 = vpop.f32.mrf.mxu2 }
 0x9d5   :  { %v605_v18 = vadd.f32 %v604_v16, %v579_v17 }
 0x9d7   :  { %v607_v20 = vadd.f32 %v1590_v54, %v605_v18 }
 0x9d9   :  { %v608_v21 = vmul.f32 %v607_v20, %v1487_v19 }
 0x9db   :  { %1254 = vtanh.f32 %v608_v21 }
 0x9e1   :  { %v1255_v22 = vpop.eup %1254 }
 0x9e2   :  { %v610_v23 = vadd.f32 1.0, %v1255_v22 }
 0x9e4   :  { %v611_v24 = vmul.f32 0.5, %v610_v23 }
 0x9e6   :  { %v612_v25 = vsel %vm1480_vm3, %v1255_v22, %v611_v24 }
 0x9e7   :  { %615 = vrot.lane.b32.xlu0 %v612_v25, %s1343_s3  ;;  %v613_v40 = vmul.f32 %v612_v25, %v1689_v56 }
 0xa31   :  { %v659_v26 = vpop.permute.xlu1 %658 }
 0xa32   :  { %v661_v27 = vmul.f32 %v659_v26, %v655_v15 }
 0xa34   :  { %663 = vrot.lane.b32.xlu0 %v661_v27, %s1344_s14 }
 0xa59   :  { %v616_v28 = vpop.permute.xlu0 %615 }
 0xa5a   :  { %v618_v29 = vmul.f32 %v616_v28, %v612_v25 }
 0xa5c   :  { %620 = vrot.lane.b32.xlu2 %v618_v29, %s1344_s14 }
 0xaa6   :  { %v664_v31 = vpop.permute.xlu0 %663 }
 0xaa7   :  { %v1727_v32 = vadd.f32 %v664_v31, %v656_v30 }
 0xaa9   :  { %1256 = vtanh.f32 %v1727_v32 }
 0xaaf   :  { %v1257_v33 = vpop.eup %1256 }
 0xab0   :  { %669 = vrot.lane.b32.xlu2 %v1257_v33, %s1343_s3 }
 0xab6   :  { %v621_v43 = vpop.permute.xlu2 %620 }
 0xab7   :  { %v1732_v44 = vadd.f32 %v621_v43, %v613_v40 }
 0xab9   :  { %1258 = vtanh.f32 %v1732_v44 }
 0xabf   :  { %v1259_v45 = vpop.eup %1258 }
 0xac0   :  { %626 = vrot.lane.b32.xlu1 %v1259_v45, %s1343_s3 }
 0xb0a   :  { %v670_v46 = vpop.permute.xlu2 %669 }
 0xb0b   :  { %v672_v47 = vmul.f32 %v670_v46, %v655_v15 }
 0xb0d   :  { %699 = vrot.lane.b32.xlu1 %v672_v47, %s1344_s14 }
 0xb32   :  { %v627_v49 = vpop.permute.xlu1 %626 }
 0xb33   :  { %v629_v50 = vmul.f32 %v627_v49, %v612_v25  ;;  %v51_v25 = vld [vmem:[%s1857_s0 + $0x30] sm:$0xff] }
 0xb34   :  { %1184 = vmatmul.msk.f32.gmra.mxu0 %vm61_vm0, %v51_v25 }
 0xb35   :  { %674 = vrot.lane.b32.xlu0 %v629_v50, %s1344_s14 }
 0xb7f   :  { %v700_v51 = vpop.permute.xlu1 %699 }
 0xb80   :  { %1202 = vmatmul.msk.f32.vlgmr.msra.gmra.mxu3 %vm61_vm0, %v700_v51  ;;  %1203 = vmatmul.msk.f32.vlgmr.msrb.gmra.mxu1 %vm61_vm0, %v700_v51 }
 0xb81   :  { %947 = vmatpush.msra.mxu3 %v1510_v35  ;;  %990 = vmatpush.msrb.mxu1 %v1432_v3  ;;  %v118_v3 = vpop.f32.mrf.mxu0 }
 0xb83   :  { %948 = vmatpush.msra.mxu3 %v1522_v37  ;;  %991 = vmatpush.msrb.mxu1 %v1438_v4  ;;  %v119_v4 = vadd.f32 %v1478_v13, %v118_v3 }
 0xb85   :  { %949 = vmatpush.msra.mxu3 %v1532_v39  ;;  %992 = vmatpush.msrb.mxu1 %v1446_v6 }
 0xb87   :  { %950 = vmatpush.msra.mxu3 %v1548_v42  ;;  %993 = vmatpush.msrb.mxu1 %v1455_v8 }
 0xba7   :  { %v675_v52 = vpop.permute.xlu0 %674 }
 0xba8   :  { %1201 = vmatmul.msk.f32.vlgmr.msra.gmra.mxu2 %vm61_vm0, %v675_v52 }
 0xba9   :  { %922 = vmatpush.msra.mxu2 %v1505_v34 }
 0xbab   :  { %923 = vmatpush.msra.mxu2 %v1515_v36 }
 0xbad   :  { %924 = vmatpush.msra.mxu2 %v1527_v38 }
 0xbaf   :  { %925 = vmatpush.msra.mxu2 %v1543_v41 }
 0xbb1   :  { %v121_v30 = vpop.f32.mrf.mxu0 }
 0xbfd   :  { %v763_v53 = vpop.f32.mrf.mxu1 }
 0xbfe   :  { %v766_v6 = vadd.f32 %v763_v53, %v119_v4 }
 0xc00   :  { %v767_v55 = vmul.f32 %v766_v6, %v1487_v19 }
 0xc02   :  { %1260 = vtanh.f32 %v767_v55 }
 0xc03   :  { %v720_v59 = vpop.f32.mrf.mxu3 }
 0xc08   :  { %v1261_v8 = vpop.eup %1260 }
 0xc09   :  { %v769_v56 = vadd.f32 1.0, %v1261_v8 }
 0xc0b   :  { %v770_v57 = vmul.f32 0.5, %v769_v56 }
 0xc0d   :  { %v771_v58 = vsel %vm1480_vm3, %v1261_v8, %v770_v57 }
 0xc0e   :  { %774 = vrot.lane.b32.xlu0 %v771_v58, %s1343_s3  ;;  %v772_v12 = vmul.f32 %v771_v58, %v1727_v32 }
 0xc2b   :  { %v695_v60 = vpop.f32.mrf.mxu2 }
 0xc2c   :  { %v721_v61 = vadd.f32 %v720_v59, %v695_v60  ;;  %v52_v59 = vld [vmem:[%s1857_s0 + $0x38] sm:$0xff] }
 0xc2d   :  { %1185 = vmatmul.msk.f32.gmra.mxu0 %vm61_vm0, %v52_v59 }
 0xc2e   :  { %v723_v62 = vadd.f32 %v1590_v54, %v721_v61 }
 0xc30   :  { %v724_v63 = vmul.f32 %v723_v62, %v1487_v19 }
 0xc32   :  { %1262 = vtanh.f32 %v724_v63 }
 0xc38   :  { %v1263_v0 = vpop.eup %1262 }
 0xc39   :  { %v726_v1 = vadd.f32 1.0, %v1263_v0 }
 0xc3b   :  { %v727_v2 = vmul.f32 0.5, %v726_v1 }
 0xc3d   :  { %v728_v5 = vsel %vm1480_vm3, %v1263_v0, %v727_v2 }
 0xc3e   :  { %731 = vrot.lane.b32.xlu2 %v728_v5, %s1343_s3  ;;  %v729_v18 = vmul.f32 %v728_v5, %v1732_v44 }
 0xc80   :  { %v775_v7 = vpop.permute.xlu0 %774 }
 0xc81   :  { %v777_v9 = vmul.f32 %v775_v7, %v771_v58 }
 0xc83   :  { %779 = vrot.lane.b32.xlu2 %v777_v9, %s1344_s14 }
 0xc98   :  { %v732_v10 = vpop.permute.xlu2 %731 }
 0xc99   :  { %v734_v11 = vmul.f32 %v732_v10, %v728_v5 }
 0xc9b   :  { %736 = vrot.lane.b32.xlu1 %v734_v11, %s1344_s14 }
 0xcaa   :  { %v124_v0 = vpop.f32.mrf.mxu0 }
 0xcab   :  { %v125_v1 = vadd.f32 %v1478_v13, %v124_v0 }
 0xcdd   :  { %v780_v15 = vpop.permute.xlu2 %779 }
 0xcde   :  { %v782_v16 = vadd.f32 %v780_v15, %v772_v12 }
 0xce0   :  { %1264 = vtanh.f32 %v782_v16 }
 0xce6   :  { %v1265_v17 = vpop.eup %1264 }
 0xce7   :  { %785 = vrot.lane.b32.xlu1 %v1265_v17, %s1343_s3 }
 0xd0d   :  { %v737_v20 = vpop.permute.xlu1 %736 }
 0xd0e   :  { %v739_v21 = vadd.f32 %v737_v20, %v729_v18 }
 0xd10   :  { %1266 = vtanh.f32 %v739_v21 }
 0xd16   :  { %v1267_v22 = vpop.eup %1266 }
 0xd17   :  { %742 = vrot.lane.b32.xlu0 %v1267_v22, %s1343_s3 }
 0xd59   :  { %v786_v23 = vpop.permute.xlu1 %785 }
 0xd5a   :  { %v788_v24 = vmul.f32 %v786_v23, %v771_v58 }
 0xd5c   :  { %815 = vrot.lane.b32.xlu0 %v788_v24, %s1344_s14 }
 0xd89   :  { %v743_v26 = vpop.permute.xlu0 %742 }
 0xd8a   :  { %v745_v27 = vmul.f32 %v743_v26, %v728_v5 }
 0xd8c   :  { %790 = vrot.lane.b32.xlu2 %v745_v27, %s1344_s14 }
 0xdce   :  { %v816_v28 = vpop.permute.xlu0 %815 }
 0xdcf   :  { %1205 = vmatmul.msk.f32.vlgmr.msrb.gmra.mxu3 %vm61_vm0, %v816_v28  ;;  %1206 = vmatmul.msk.f32.vlgmr.msra.gmra.mxu1 %vm61_vm0, %v816_v28 }
 0xdd0   :  { %1063 = vmatpush.msrb.mxu3 %v1510_v35  ;;  %v122_v35 = vadd.f32 %v1478_v13, %v121_v30 }
 0xdd2   :  { %1064 = vmatpush.msrb.mxu3 %v1522_v37 }
 0xdd4   :  { %1065 = vmatpush.msrb.mxu3 %v1532_v39 }
 0xdd6   :  { %1066 = vmatpush.msrb.mxu3 %v1548_v42 }
 0xde6   :  { %v791_v29 = vpop.permute.xlu2 %790 }
 0xde7   :  { %1204 = vmatmul.msk.f32.vlgmr.msrb.gmra.mxu2 %vm61_vm0, %v791_v29 }
 0xde8   :  { %1038 = vmatpush.msrb.mxu2 %v1505_v34 }
 0xdea   :  { %1039 = vmatpush.msrb.mxu2 %v1515_v36 }
 0xdec   :  { %1040 = vmatpush.msrb.mxu2 %v1527_v38 }
 0xdee   :  { %1041 = vmatpush.msrb.mxu2 %v1543_v41 }
 0xe4c   :  { %v879_v31 = vpop.f32.mrf.mxu1 }
 0xe4d   :  { %v882_v37 = vadd.f32 %v879_v31, %v122_v35 }
 0xe4f   :  { %v883_v39 = vmul.f32 %v882_v37, %v1487_v19 }
 0xe51   :  { %1268 = vtanh.f32 %v883_v39 }
 0xe52   :  { %v836_v36 = vpop.f32.mrf.mxu3 }
 0xe57   :  { %v1269_v42 = vpop.eup %1268 }
 0xe58   :  { %v885_v32 = vadd.f32 1.0, %v1269_v42 }
 0xe5a   :  { %v886_v33 = vmul.f32 0.5, %v885_v32 }
 0xe5c   :  { %v887_v34 = vsel %vm1480_vm3, %v1269_v42, %v886_v33 }
 0xe5d   :  { %890 = vrot.lane.b32.xlu2 %v887_v34, %s1343_s3  ;;  %v888_v52 = vmul.f32 %v887_v34, %v782_v16 }
 0xe6a   :  { %v811_v38 = vpop.f32.mrf.mxu2 }
 0xe6b   :  { %v837_v40 = vadd.f32 %v836_v36, %v811_v38 }
 0xe6d   :  { %v839_v41 = vadd.f32 %v1590_v54, %v837_v40 }
 0xe6f   :  { %v840_v43 = vmul.f32 %v839_v41, %v1487_v19 }
 0xe71   :  { %1270 = vtanh.f32 %v840_v43 }
 0xe77   :  { %v1271_v44 = vpop.eup %1270 }
 0xe78   :  { %v842_v45 = vadd.f32 1.0, %v1271_v44 }
 0xe7a   :  { %v843_v46 = vmul.f32 0.5, %v842_v45 }
 0xe7c   :  { %v844_v47 = vsel %vm1480_vm3, %v1271_v44, %v843_v46 }
 0xe7d   :  { %847 = vrot.lane.b32.xlu1 %v844_v47, %s1343_s3  ;;  %v845_v6 = vmul.f32 %v844_v47, %v739_v21 }
 0xeb7   :  { %v891_v48 = vpop.permute.xlu2 %890 }
 0xeb8   :  { %v893_v49 = vmul.f32 %v891_v48, %v887_v34 }
 0xeba   :  { %895 = vrot.lane.b32.xlu1 %v893_v49, %s1344_s14 }
 0xeef   :  { %v848_v50 = vpop.permute.xlu1 %847 }
 0xef0   :  { %v850_v51 = vmul.f32 %v848_v50, %v844_v47 }
 0xef2   :  { %852 = vrot.lane.b32.xlu0 %v850_v51, %s1344_s14 }
 0xf2c   :  { %v896_v3 = vpop.permute.xlu1 %895 }
 0xf2d   :  { %v898_v4 = vadd.f32 %v896_v3, %v888_v52  ;;  %v1222_v3 = vld [vmem:[%s1864_s7] ss:$0 sm:$0xff]  ;;  %s1346_s7 = smov [#allocation3]  }
 0xf2f   :  { %1272 = vtanh.f32 %v898_v4 }
 0xf35   :  { %v1273_v53 = vpop.eup %1272 }
 0xf36   :  { %901 = vrot.lane.b32.xlu0 %v1273_v53, %s1343_s3 }
 0xf64   :  { %v853_v55 = vpop.permute.xlu0 %852 }
 0xf65   :  { %v855_v8 = vadd.f32 %v853_v55, %v845_v6 }
 0xf67   :  { %1274 = vtanh.f32 %v855_v8 }
 0xf6d   :  { %v1275_v56 = vpop.eup %1274 }
 0xf6e   :  { %858 = vrot.lane.b32.xlu2 %v1275_v56, %s1343_s3 }
 0xfa8   :  { %v902_v57 = vpop.permute.xlu0 %901 }
 0xfa9   :  { %v904_v58 = vmul.f32 %v902_v57, %v887_v34 }
 0xfab   :  { %931 = vrot.lane.b32.xlu2 %v904_v58, %s1344_s14 }
 0xfc8   :  { %v859_v60 = vpop.permute.xlu2 %858 }
 0xfc9   :  { %v861_v61 = vmul.f32 %v859_v60, %v844_v47 }
 0xfcb   :  { %906 = vrot.lane.b32.xlu1 %v861_v61, %s1344_s14  ;;  %v1223_v61 = vld [vmem:[#allocation2] ss:$0 sm:$0xff] }
0x1005   :  { %v932_v62 = vpop.permute.xlu2 %931 }
0x1006   :  { %1208 = vmatmul.msk.f32.vlgmr.msra.gmra.mxu3 %vm61_vm0, %v932_v62  ;;  %1209 = vmatmul.msk.f32.vlgmr.msrb.gmra.mxu1 %vm61_vm0, %v932_v62 }
0x103d   :  { %v907_v63 = vpop.permute.xlu1 %906 }
0x103e   :  { %1207 = vmatmul.msk.f32.vlgmr.msra.gmra.mxu2 %vm61_vm0, %v907_v63 }
0x1083   :  { %v995_v2 = vpop.f32.mrf.mxu1 }
0x1084   :  { %v998_v5 = vadd.f32 %v995_v2, %v125_v1 }
0x1086   :  { %v999_v7 = vmul.f32 %v998_v5, %v1487_v19 }
0x1088   :  { %1276 = vtanh.f32 %v999_v7 }
0x1089   :  { %v952_v15 = vpop.f32.mrf.mxu3 }
0x108e   :  { %v1277_v9 = vpop.eup %1276 }
0x108f   :  { %v1001_v10 = vadd.f32 1.0, %v1277_v9 }
0x1091   :  { %v1002_v11 = vmul.f32 0.5, %v1001_v10 }
0x1093   :  { %v1003_v12 = vsel %vm1480_vm3, %v1277_v9, %v1002_v11 }
0x1094   :  { %1006 = vrot.lane.b32.xlu1 %v1003_v12, %s1343_s3  ;;  %v1004_v28 = vmul.f32 %v1003_v12, %v898_v4 }
0x10c1   :  { %v927_v16 = vpop.f32.mrf.mxu2 }
0x10c2   :  { %v953_v17 = vadd.f32 %v952_v15, %v927_v16 }
0x10c4   :  { %v955_v18 = vadd.f32 %v1590_v54, %v953_v17 }
0x10c6   :  { %v956_v13 = vmul.f32 %v955_v18, %v1487_v19 }
0x10c8   :  { %1278 = vtanh.f32 %v956_v13 }
0x10ce   :  { %v1279_v20 = vpop.eup %1278 }
0x10cf   :  { %v958_v21 = vadd.f32 1.0, %v1279_v20 }
0x10d1   :  { %v959_v22 = vmul.f32 0.5, %v958_v21 }
0x10d3   :  { %v960_v23 = vsel %vm1480_vm3, %v1279_v20, %v959_v22 }
0x10d4   :  { %963 = vrot.lane.b32.xlu0 %v960_v23, %s1343_s3  ;;  %v961_v31 = vmul.f32 %v960_v23, %v855_v8 }
0x1106   :  { %v1007_v24 = vpop.permute.xlu1 %1006 }
0x1107   :  { %v1009_v25 = vmul.f32 %v1007_v24, %v1003_v12 }
0x1109   :  { %1011 = vrot.lane.b32.xlu0 %v1009_v25, %s1344_s14 }
0x1146   :  { %v964_v26 = vpop.permute.xlu0 %963 }
0x1147   :  { %v966_v27 = vmul.f32 %v964_v26, %v960_v23 }
0x1149   :  { %968 = vrot.lane.b32.xlu2 %v966_v27, %s1344_s14 }
0x117b   :  { %v1012_v29 = vpop.permute.xlu0 %1011 }
0x117c   :  { %v1014_v30 = vadd.f32 %v1012_v29, %v1004_v28 }
0x117e   :  { %1280 = vtanh.f32 %v1014_v30 }
0x1184   :  { %v1281_v35 = vpop.eup %1280 }
0x1185   :  { %1017 = vrot.lane.b32.xlu2 %v1281_v35, %s1343_s3 }
0x11a3   :  { %v969_v37 = vpop.permute.xlu2 %968 }
0x11a4   :  { %v971_v39 = vadd.f32 %v969_v37, %v961_v31 }
0x11a6   :  { %1282 = vtanh.f32 %v971_v39 }
0x11ac   :  { %v1283_v42 = vpop.eup %1282 }
0x11ad   :  { %974 = vrot.lane.b32.xlu1 %v1283_v42, %s1343_s3 }
0x11df   :  { %v1018_v32 = vpop.permute.xlu2 %1017 }
0x11e0   :  { %v1020_v33 = vmul.f32 %v1018_v32, %v1003_v12 }
0x11e2   :  { %1047 = vrot.lane.b32.xlu1 %v1020_v33, %s1344_s14 }
0x121f   :  { %v975_v34 = vpop.permute.xlu1 %974 }
0x1220   :  { %v977_v36 = vmul.f32 %v975_v34, %v960_v23 }
0x1222   :  { %1022 = vrot.lane.b32.xlu0 %v977_v36, %s1344_s14 }
0x1254   :  { %v1048_v38 = vpop.permute.xlu1 %1047 }
0x1255   :  { %1120 = vst.msk [vmem:[#allocation3] sm:$0xff] %vm61_vm0, %v1048_v38  ;;  %1211 = vmatmul.msk.f32.vlgmr.msrb.gmra.mxu3 %vm61_vm0, %v1048_v38 }
0x1294   :  { %v1023_v40 = vpop.permute.xlu0 %1022 }
0x1295   :  { %1210 = vmatmul.msk.f32.vlgmr.msrb.gmra.mxu2 %vm61_vm0, %v1023_v40 }
0x12d8   :  { %v1068_v41 = vpop.f32.mrf.mxu3 }
0x1318   :  { %v1043_v43 = vpop.f32.mrf.mxu2 }
0x1319   :  { %v1069_v44 = vadd.f32 %v1068_v41, %v1043_v43 }
0x131b   :  { %v1071_v45 = vadd.f32 %v1590_v54, %v1069_v44 }
0x131d   :  { %v1072_v46 = vmul.f32 %v1071_v45, %v1487_v19 }
0x131f   :  { %1284 = vtanh.f32 %v1072_v46 }
0x1325   :  { %v1285_v47 = vpop.eup %1284 }
0x1326   :  { %v1074_v48 = vadd.f32 1.0, %v1285_v47 }
0x1328   :  { %v1075_v49 = vmul.f32 0.5, %v1074_v48 }
0x132a   :  { %v1076_v50 = vsel %vm1480_vm3, %v1285_v47, %v1075_v49 }
0x132b   :  { %1079 = vrot.lane.b32.xlu2 %v1076_v50, %s1343_s3  ;;  %v1077_v19 = vmul.f32 %v1076_v50, %v971_v39 }
0x1333   :  { %1097 = vrot.lane.b32.xlu2 %v1222_v3, %s1345_s27 }
0x1385   :  { %v1080_v51 = vpop.permute.xlu2 %1079 }
0x1386   :  { %v1082_v52 = vmul.f32 %v1080_v51, %v1076_v50 }
0x1388   :  { %1084 = vrot.lane.b32.xlu0 %v1082_v52, %s1344_s14 }
0x138d   :  { %v1098_v6 = vpop.permute.xlu2 %1097 }
0x13fa   :  { %v1085_v54 = vpop.permute.xlu0 %1084 }
0x13fb   :  { %v1087_v4 = vadd.f32 %v1085_v54, %v1077_v19 }
0x13fd   :  { %1286 = vtanh.f32 %v1087_v4 }
0x1403   :  { %v1287_v53 = vpop.eup %1286 }
0x1404   :  { %1090 = vrot.lane.b32.xlu1 %v1287_v53, %s1343_s3  ;;  %s1144_s3 = sshll.u32 %s1346_s7, 4  ;;  %s1145_s3 = int_to_ptr.vmem [resolvable:$true] %s1144_s3 }
0x1476   :  { %v1091_v14 = vpop.permute.xlu1 %1090 }
0x1477   :  { %v1093_v55 = vmul.f32 %v1091_v14, %v1076_v50 }
0x1479   :  { %v1100_v8 = vmul.f32 %v1098_v6, %v1093_v55  ;;  %1122 = vrot.lane.b32.xlu2 %v1093_v55, %s1344_s14 }
0x147b   :  { %1102 = vrot.lane.b32.xlu0 %v1100_v8, %s1344_s14  ;;  %s1347_s14 = smov 128  }
0x1481   :  { %1133 = vrot.lane.b32.xlu2 %v1087_v4, %s1345_s27 }
0x1483   :  { %1128 = vrot.lane.b32.xlu0 %v1014_v30, %s1345_s27 }
0x14d3   :  { %v1123_v56 = vpop.permute.xlu2 %1122 }
0x14d4   :  { %1126 = vst.msk [vmem:[#allocation3 + $0x8] sm:$0xff] %vm61_vm0, %v1123_v56 }
0x14d5   :  { %1152 = dma.vmem_to_hbm [thread:$0]  %s1145_s3, 256, %s1147_s2, [#allocation4], %s1347_s14, %s1347_s14, %s1348_s29  }
0x14db   :  { %v1134_v57 = vpop.permute.xlu2 %1133 }
0x14dc   :  { %1137 = vst.msk [vmem:[#allocation5 + $0x8] sm:$0xff] %vm61_vm0, %v1134_v57 }
0x14ed   :  { %v1103_v58 = vpop.permute.xlu0 %1102 }
0x14ee   :  { %v1105_v59 = vsel %vm61_vm0, %v1103_v58, 0.0 }
0x14ef   :  { %1106 = vadd.xlane.f32.xlu1 %v1105_v59 }
0x14f5   :  { %v1129_v60 = vpop.permute.xlu0 %1128 }
0x14f6   :  { %1131 = vst.msk [vmem:[#allocation5] sm:$0xff] %vm61_vm0, %v1129_v60 }
0x14f7   :  { %1165 = dma.vmem_to_hbm [thread:$0]  %s1158_s5, 256, %s1160_s9, [#allocation6], %s1347_s14, %s1347_s14, %s1348_s29  }
0x1562   :  { %v1107_v62 = vpop.xlane.xlu1 %1106 }
0x1563   :  { %v1112_v63 = vadd.f32 %v1223_v61, %v1107_v62 }
0x1565   :  { %v1113_v0 = vmul.f32 0.5, %v1112_v63 }
0x1567   :  { %1288 = vtanh.f32 %v1113_v0 }
0x156d   :  { %v1289_v1 = vpop.eup %1288 }
0x156e   :  { %v1115_v2 = vadd.f32 1.0, %v1289_v1 }
0x1570   :  { %v1116_v5 = vmul.f32 0.5, %v1115_v2 }
0x1572   :  { %1118 = vst.msk [vmem:[%s1868_s11] sm:$0xff] %vm1117_vm4, %v1116_v5 }
0x1573   :  { %1338 = dma.done.wait [#allocation4], 256  }
0x1574   :  { %1339 = vsyncadd [#allocation4], 4294967040 }
0x1575   :  { %1340 = dma.done.wait [#allocation6], 256  }
0x1576   :  { %1341 = vsyncadd [#allocation6], 4294967040 }
0x1577   :  { %1176 = vsyncpa [#allocation4], 1 }
0x1578   :  { %1177 = vsyncpa [#allocation6], 1 }

</bundles_post_ra>
